<compile_context>
chip_gen: v7x
topology: tpu7x:2x2x1
jax: 0.10.0
libtpu: 0.0.40
codegen_flags: <defaults>
</compile_context>

<pallas_src>
import functools

import jax
import jax.numpy as jnp
from jax import lax
from jax.experimental import pallas as pl
from jax.experimental.pallas import tpu as pltpu


def _encoder_kernel(n_layers, hid_dim, n_steps,
                    x_ref, wx0_ref, wblk_ref, b_ref,
                    h_out_ref, c_out_ref, xproj_scr):
    """Whole encoder forward in one kernel invocation (no grid), wavefront LSTM."""
    H = hid_dim
    L = n_layers
    T = n_steps
    n_wave = T + L - 1

    # Hoisted, time-parallel layer-0 input projection: (T, in) @ (in, 4H) done
    # once.  Stored padded to (n_wave, L*4H): upper-layer lanes and ramp-down
    # rows stay zero so the hot loop adds one full, aligned row.
    xproj_scr[...] = jnp.zeros_like(xproj_scr)
    xproj_scr[pl.ds(0, T), pl.ds(0, 4 * H)] = jnp.dot(
        x_ref[...], wx0_ref[...], preferred_element_type=jnp.float32)

    # Loop-invariant loads hoisted off the recurrence chain.
    w_blk = wblk_ref[...]            # (L*2H, L*4H) block-diagonal recurrent weight
    b_row = b_ref[...]               # (1, L*4H) packed biases (b_ih + b_hh)
    zeros_h = jnp.zeros((1, H), jnp.float32)

    def step(w, carry):
        hs, cs = carry  # tuples of (1, H) per layer

        # Wavefront input row: slot l = [h_{l-1}(t_l), h_l(t_l - 1)], t_l = w - l.
        # Layer 0's "below" half is zero (its x path is the hoisted projection).
        pieces = [zeros_h, hs[0]]
        for l in range(1, L):
            pieces.append(hs[l - 1])
            pieces.append(hs[l])
        inrow = jnp.concatenate(pieces, axis=1)              # (1, L*2H)

        # One fused block-diagonal gate GEMM for every layer of the wavefront.
        gates = (jnp.dot(inrow, w_blk, preferred_element_type=jnp.float32)
                 + b_row + xproj_scr[pl.ds(w, 1), :])         # (1, L*4H)
        sig = jax.nn.sigmoid(gates)                           # one EUP pass

        new_hs, new_cs = [], []
        for l in range(L):
            base = l * 4 * H
            i_g = sig[:, base:base + H]
            f_g = sig[:, base + H:base + 2 * H]
            o_g = sig[:, base + 3 * H:base + 4 * H]
            g_g = jnp.tanh(gates[:, base + 2 * H:base + 3 * H])
            c_new = f_g * cs[l] + i_g * g_g
            h_new = o_g * jnp.tanh(c_new)
            # Layer l is live only for wavefronts l .. T-1+l (ramp-up/ramp-down).
            active = jnp.logical_and(w >= l, w < T + l)
            new_cs.append(jnp.where(active, c_new, cs[l]))
            new_hs.append(jnp.where(active, h_new, hs[l]))
        return tuple(new_hs), tuple(new_cs)

    init = (tuple(zeros_h for _ in range(L)), tuple(zeros_h for _ in range(L)))
    # Full unroll only for tiny trip counts; partial unroll keeps scheduler
    # visibility without exploding code size / vreg live ranges.
    unroll = n_wave if n_wave <= 16 else 8
    hs, cs = lax.fori_loop(0, n_wave, step, init, unroll=unroll)

    for l in range(L):
        h_out_ref[pl.ds(l, 1), :] = hs[l]
        c_out_ref[pl.ds(l, 1), :] = cs[l]


def encoder_forward(batch, packed_params, *, n_layers, hid_dim):
    """Returns (encoder_hidden, encoder_cell), each of shape (n_layers, hid_dim)."""
    assert batch.shape[0] == 1, "PyTorch forward only executes for batch_size == 1"
    _, trg_len, input_dim = batch.shape

    if trg_len <= 1:  # loop `for ei in range(1, trg_len)` never runs -> zero states
        z = jnp.zeros((n_layers, hid_dim), jnp.float32)
        return z, z

    n_steps = trg_len - 1                         # ei = 1 .. trg_len - 1
    n_wave = n_steps + n_layers - 1
    x_rows = batch[0, 1:, :].astype(jnp.float32)  # (n_steps, input_dim)
    w_x0, w_blk, b_pack = packed_params

    kernel = functools.partial(_encoder_kernel, n_layers, hid_dim, n_steps)
    vmem_spec = pl.BlockSpec(memory_space=pltpu.MemorySpace.VMEM)

    # VMEM budget with headroom: respect v7x (64 MiB physical) / v5e (16 MiB
    # default scoped) when trg_len scales.
    need_bytes = 4 * (x_rows.size + w_x0.size + w_blk.size + b_pack.size
                      + n_wave * n_layers * 4 * hid_dim
                      + 2 * n_layers * hid_dim)
    vmem_limit = int(min(max(4 * need_bytes, 8 << 20), 48 << 20))

    h, c = pl.pallas_call(
        kernel,
        out_shape=(jax.ShapeDtypeStruct((n_layers, hid_dim), jnp.float32),
                   jax.ShapeDtypeStruct((n_layers, hid_dim), jnp.float32)),
        in_specs=[vmem_spec] * 4,
        out_specs=(vmem_spec, vmem_spec),
        scratch_shapes=[pltpu.VMEM((n_wave, n_layers * 4 * hid_dim), jnp.float32)],
        compiler_params=pltpu.CompilerParams(vmem_limit_bytes=vmem_limit),
    )(x_rows, w_x0, w_blk, b_pack)
    return h, c


def init_lstm_params(key, input_dim, hid_dim, n_layers):
    """Deterministic PyTorch-style U(-1/sqrt(H), 1/sqrt(H)) LSTM parameters.

    Returns the raw per-layer tensors (for the reference) and the kernel packing:
      w_x0  : (input_dim, 4H)         layer-0 input weights, gates (i,f,g,o) on lanes
      w_blk : (L*2H, L*4H)            block-diagonal; block l rows = [w_ih_l^T; w_hh_l^T]
                                      (layer-0 "below" rows are zero: x path is w_x0)
      b_pack: (1, L*4H)               per-layer b_ih + b_hh, packed along lanes
    """
    H = hid_dim
    L = n_layers
    bound = 1.0 / (H ** 0.5)
    keys = jax.random.split(key, n_layers * 4)
    raw = []
    for l in range(n_layers):
        in_l = input_dim if l == 0 else H
        kk = keys[4 * l: 4 * l + 4]
        w_ih = jax.random.uniform(kk[0], (4 * H, in_l), minval=-bound, maxval=bound)
        w_hh = jax.random.uniform(kk[1], (4 * H, H), minval=-bound, maxval=bound)
        b_ih = jax.random.uniform(kk[2], (4 * H,), minval=-bound, maxval=bound)
        b_hh = jax.random.uniform(kk[3], (4 * H,), minval=-bound, maxval=bound)
        raw.append((w_ih, w_hh, b_ih, b_hh))

    w_x0 = raw[0][0].T.astype(jnp.float32)                     # (input_dim, 4H)

    w_blk = jnp.zeros((L * 2 * H, L * 4 * H), jnp.float32)
    # Layer 0: only the hidden path lives in the block (rows H:2H).
    w_blk = w_blk.at[H:2 * H, 0:4 * H].set(raw[0][1].T)
    for l in range(1, L):
        r0, c0 = l * 2 * H, l * 4 * H
        w_blk = w_blk.at[r0:r0 + H, c0:c0 + 4 * H].set(raw[l][0].T)       # below
        w_blk = w_blk.at[r0 + H:r0 + 2 * H, c0:c0 + 4 * H].set(raw[l][1].T)  # h_prev

    b_pack = jnp.concatenate([raw[l][2] + raw[l][3] for l in range(L)]
                             ).reshape(1, L * 4 * H).astype(jnp.float32)
    return raw, (w_x0, w_blk, b_pack)


def encoder_ref(batch, raw, n_layers, hid_dim, trg_len):
    """Pure-JAX reference of the PyTorch forward (eval mode, batch_size == 1)."""
    x = batch[0]
    H = hid_dim
    h = jnp.zeros((n_layers, H), jnp.float32)
    c = jnp.zeros((n_layers, H), jnp.float32)
    for t in range(1, trg_len):
        inp = x[t]
        for l in range(n_layers):
            w_ih, w_hh, b_ih, b_hh = raw[l]
            gates = w_ih @ inp + b_ih + w_hh @ h[l] + b_hh
            i = jax.nn.sigmoid(gates[0:H])
            f = jax.nn.sigmoid(gates[H:2 * H])
            g = jnp.tanh(gates[2 * H:3 * H])
            o = jax.nn.sigmoid(gates[3 * H:4 * H])
            c = c.at[l].set(f * c[l] + i * g)
            h = h.at[l].set(o * jnp.tanh(c[l]))
            inp = h[l]
    return h, c


if __name__ == "__main__":
    input_dim, hid_dim, n_layers, num_seq = 8, 32, 2, 8
    batch_size = 1  # only case the reference PyTorch forward actually supports

    key = jax.random.PRNGKey(0)
    kx, kp = jax.random.split(key)
    batch = jax.random.normal(kx, (batch_size, num_seq, input_dim), dtype=jnp.float32)

    raw_params, packed_params = init_lstm_params(kp, input_dim, hid_dim, n_layers)

    h, c = encoder_forward(batch, packed_params, n_layers=n_layers, hid_dim=hid_dim)
    jax.block_until_ready((h, c))

    h_ref, c_ref = encoder_ref(batch, raw_params, n_layers, hid_dim, num_seq)
    assert h.shape == (n_layers, hid_dim) and c.shape == (n_layers, hid_dim)
    assert jnp.allclose(h, h_ref, atol=1e-5, rtol=1e-5)
    assert jnp.allclose(c, c_ref, atol=1e-5, rtol=1e-5)

    print("KERNEL_OK")
</pallas_src>

<mosaic_0001>
module attributes {stable_mosaic.version = 11 : i64} {
  func.func @_encoder_kernel(%arg0: memref<7x8xf32, #tpu.memory_space<vmem>>, %arg1: memref<8x128xf32, #tpu.memory_space<vmem>>, %arg2: memref<128x256xf32, #tpu.memory_space<vmem>>, %arg3: memref<1x256xf32, #tpu.memory_space<vmem>>, %arg4: memref<2x32xf32, #tpu.memory_space<vmem>>, %arg5: memref<2x32xf32, #tpu.memory_space<vmem>>, %arg6: memref<8x256xf32, #tpu.memory_space<vmem>>) attributes {dimension_semantics = [], scalar_prefetch = 0 : i64, scratch_operands = 1 : i64, tpu.core_type = #tpu.core_type<tc>} {
    %cst = arith.constant 0.000000e+00 : f32
    %0 = vector.broadcast %cst : f32 to vector<8x256xf32>
    %c0 = arith.constant 0 : index
    %c0_0 = arith.constant 0 : index
    %1 = vector.load %arg6[%c0, %c0_0] : memref<8x256xf32, #tpu.memory_space<vmem>>, vector<8x256xf32>
    tpu.vector_store %arg6[%c0, %c0_0], %0 {strides = array<i32>} : memref<8x256xf32, #tpu.memory_space<vmem>>, vector<8x256xf32>,
    %c0_1 = arith.constant 0 : index
    %c0_2 = arith.constant 0 : index
    %2 = vector.load %arg0[%c0_1, %c0_2] : memref<7x8xf32, #tpu.memory_space<vmem>>, vector<7x8xf32>
    %c0_3 = arith.constant 0 : index
    %c0_4 = arith.constant 0 : index
    %3 = vector.load %arg1[%c0_3, %c0_4] : memref<8x128xf32, #tpu.memory_space<vmem>>, vector<8x128xf32>
    %cst_5 = arith.constant dense<0.000000e+00> : vector<7x128xf32>
    %4 = tpu.matmul %2, %3, %cst_5 {dimension_numbers = #tpu.dot_dimension_numbers<[1], [0], [0], [1], [0, 0, 1, 1], [], []>} : vector<7x8xf32>, vector<8x128xf32>, vector<7x128xf32> -> vector<7x128xf32>
    %c0_6 = arith.constant 0 : index
    %c0_7 = arith.constant 0 : index
    %5 = vector.load %arg6[%c0_6, %c0_7] : memref<8x256xf32, #tpu.memory_space<vmem>>, vector<7x128xf32>
    tpu.vector_store %arg6[%c0_6, %c0_7], %4 {strides = array<i32>} : memref<8x256xf32, #tpu.memory_space<vmem>>, vector<7x128xf32>,
    %c0_8 = arith.constant 0 : index
    %c0_9 = arith.constant 0 : index
    %6 = vector.load %arg2[%c0_8, %c0_9] : memref<128x256xf32, #tpu.memory_space<vmem>>, vector<128x256xf32>
    %c0_10 = arith.constant 0 : index
    %c0_11 = arith.constant 0 : index
    %7 = vector.load %arg3[%c0_10, %c0_11] : memref<1x256xf32, #tpu.memory_space<vmem>>, vector<1x256xf32>
    %cst_12 = arith.constant 0.000000e+00 : f32
    %8 = vector.broadcast %cst_12 : f32 to vector<1x32xf32>
    %c0_i32 = arith.constant 0 : i32
    %9 = tpu.concatenate %8, %8, %8, %8 in 1 : vector<1x32xf32>, vector<1x32xf32>, vector<1x32xf32>, vector<1x32xf32> -> vector<1x128xf32>
    %cst_13 = arith.constant dense<0.000000e+00> : vector<1x256xf32>
    %10 = tpu.matmul %9, %6, %cst_13 {dimension_numbers = #tpu.dot_dimension_numbers<[1], [0], [0], [1], [0, 0, 1, 1], [], []>} : vector<1x128xf32>, vector<128x256xf32>, vector<1x256xf32> -> vector<1x256xf32>
    %11 = arith.addf %10, %7 : vector<1x256xf32>
    %12 = arith.index_cast %c0_i32 : i32 to index
    %c0_14 = arith.constant 0 : index
    %13 = vector.load %arg6[%12, %c0_14] : memref<8x256xf32, #tpu.memory_space<vmem>>, vector<1x256xf32>
    %14 = arith.addf %11, %13 : vector<1x256xf32>
    %15 = arith.negf %14 : vector<1x256xf32>
    %16 = math.exp %15 : vector<1x256xf32>
    %cst_15 = arith.constant 1.000000e+00 : f32
    %17 = vector.broadcast %cst_15 : f32 to vector<1x256xf32>
    %18 = arith.addf %17, %16 : vector<1x256xf32>
    %19 = arith.divf %17, %18 : vector<1x256xf32>
    %20 = vector.extract_strided_slice %19 {offsets = [0, 0], sizes = [1, 32], strides = [1, 1]} : vector<1x256xf32> to vector<1x32xf32>
    %21 = vector.extract_strided_slice %19 {offsets = [0, 32], sizes = [1, 32], strides = [1, 1]} : vector<1x256xf32> to vector<1x32xf32>
    %22 = vector.extract_strided_slice %19 {offsets = [0, 96], sizes = [1, 32], strides = [1, 1]} : vector<1x256xf32> to vector<1x32xf32>
    %23 = vector.extract_strided_slice %14 {offsets = [0, 64], sizes = [1, 32], strides = [1, 1]} : vector<1x256xf32> to vector<1x32xf32>
    %24 = math.tanh %23 : vector<1x32xf32>
    %25 = arith.mulf %21, %8 : vector<1x32xf32>
    %26 = arith.mulf %20, %24 : vector<1x32xf32>
    %27 = arith.addf %25, %26 : vector<1x32xf32>
    %28 = math.tanh %27 : vector<1x32xf32>
    %29 = arith.mulf %22, %28 : vector<1x32xf32>
    %c0_i32_16 = arith.constant 0 : i32
    %30 = arith.cmpi sge, %c0_i32, %c0_i32_16 : i32
    %c7_i32 = arith.constant 7 : i32
    %31 = arith.cmpi slt, %c0_i32, %c7_i32 : i32
    %32 = arith.andi %30, %31 : i1
    %33 = arith.select %32, %27, %8 : vector<1x32xf32>
    %34 = arith.select %32, %29, %8 : vector<1x32xf32>
    %35 = vector.extract_strided_slice %19 {offsets = [0, 128], sizes = [1, 32], strides = [1, 1]} : vector<1x256xf32> to vector<1x32xf32>
    %36 = vector.extract_strided_slice %19 {offsets = [0, 160], sizes = [1, 32], strides = [1, 1]} : vector<1x256xf32> to vector<1x32xf32>
    %37 = vector.extract_strided_slice %19 {offsets = [0, 224], sizes = [1, 32], strides = [1, 1]} : vector<1x256xf32> to vector<1x32xf32>
    %38 = vector.extract_strided_slice %14 {offsets = [0, 192], sizes = [1, 32], strides = [1, 1]} : vector<1x256xf32> to vector<1x32xf32>
    %39 = math.tanh %38 : vector<1x32xf32>
    %40 = arith.mulf %36, %8 : vector<1x32xf32>
    %41 = arith.mulf %35, %39 : vector<1x32xf32>
    %42 = arith.addf %40, %41 : vector<1x32xf32>
    %43 = math.tanh %42 : vector<1x32xf32>
    %44 = arith.mulf %37, %43 : vector<1x32xf32>
    %c1_i32 = arith.constant 1 : i32
    %45 = arith.cmpi sge, %c0_i32, %c1_i32 : i32
    %c8_i32 = arith.constant 8 : i32
    %46 = arith.cmpi slt, %c0_i32, %c8_i32 : i32
    %47 = arith.andi %45, %46 : i1
    %48 = arith.select %47, %42, %8 : vector<1x32xf32>
    %49 = arith.select %47, %44, %8 : vector<1x32xf32>
    %c1_i32_17 = arith.constant 1 : i32
    %50 = tpu.concatenate %8, %34, %34, %49 in 1 : vector<1x32xf32>, vector<1x32xf32>, vector<1x32xf32>, vector<1x32xf32> -> vector<1x128xf32>
    %cst_18 = arith.constant dense<0.000000e+00> : vector<1x256xf32>
    %51 = tpu.matmul %50, %6, %cst_18 {dimension_numbers = #tpu.dot_dimension_numbers<[1], [0], [0], [1], [0, 0, 1, 1], [], []>} : vector<1x128xf32>, vector<128x256xf32>, vector<1x256xf32> -> vector<1x256xf32>
    %52 = arith.addf %51, %7 : vector<1x256xf32>
    %53 = arith.index_cast %c1_i32_17 : i32 to index
    %c0_19 = arith.constant 0 : index
    %54 = vector.load %arg6[%53, %c0_19] : memref<8x256xf32, #tpu.memory_space<vmem>>, vector<1x256xf32>
    %55 = arith.addf %52, %54 : vector<1x256xf32>
    %56 = arith.negf %55 : vector<1x256xf32>
    %57 = math.exp %56 : vector<1x256xf32>
    %cst_20 = arith.constant 1.000000e+00 : f32
    %58 = vector.broadcast %cst_20 : f32 to vector<1x256xf32>
    %59 = arith.addf %58, %57 : vector<1x256xf32>
    %60 = arith.divf %58, %59 : vector<1x256xf32>
    %61 = vector.extract_strided_slice %60 {offsets = [0, 0], sizes = [1, 32], strides = [1, 1]} : vector<1x256xf32> to vector<1x32xf32>
    %62 = vector.extract_strided_slice %60 {offsets = [0, 32], sizes = [1, 32], strides = [1, 1]} : vector<1x256xf32> to vector<1x32xf32>
    %63 = vector.extract_strided_slice %60 {offsets = [0, 96], sizes = [1, 32], strides = [1, 1]} : vector<1x256xf32> to vector<1x32xf32>
    %64 = vector.extract_strided_slice %55 {offsets = [0, 64], sizes = [1, 32], strides = [1, 1]} : vector<1x256xf32> to vector<1x32xf32>
    %65 = math.tanh %64 : vector<1x32xf32>
    %66 = arith.mulf %62, %33 : vector<1x32xf32>
    %67 = arith.mulf %61, %65 : vector<1x32xf32>
    %68 = arith.addf %66, %67 : vector<1x32xf32>
    %69 = math.tanh %68 : vector<1x32xf32>
    %70 = arith.mulf %63, %69 : vector<1x32xf32>
    %c0_i32_21 = arith.constant 0 : i32
    %71 = arith.cmpi sge, %c1_i32_17, %c0_i32_21 : i32
    %c7_i32_22 = arith.constant 7 : i32
    %72 = arith.cmpi slt, %c1_i32_17, %c7_i32_22 : i32
    %73 = arith.andi %71, %72 : i1
    %74 = arith.select %73, %68, %33 : vector<1x32xf32>
    %75 = arith.select %73, %70, %34 : vector<1x32xf32>
    %76 = vector.extract_strided_slice %60 {offsets = [0, 128], sizes = [1, 32], strides = [1, 1]} : vector<1x256xf32> to vector<1x32xf32>
    %77 = vector.extract_strided_slice %60 {offsets = [0, 160], sizes = [1, 32], strides = [1, 1]} : vector<1x256xf32> to vector<1x32xf32>
    %78 = vector.extract_strided_slice %60 {offsets = [0, 224], sizes = [1, 32], strides = [1, 1]} : vector<1x256xf32> to vector<1x32xf32>
    %79 = vector.extract_strided_slice %55 {offsets = [0, 192], sizes = [1, 32], strides = [1, 1]} : vector<1x256xf32> to vector<1x32xf32>
    %80 = math.tanh %79 : vector<1x32xf32>
    %81 = arith.mulf %77, %48 : vector<1x32xf32>
    %82 = arith.mulf %76, %80 : vector<1x32xf32>
    %83 = arith.addf %81, %82 : vector<1x32xf32>
    %84 = math.tanh %83 : vector<1x32xf32>
    %85 = arith.mulf %78, %84 : vector<1x32xf32>
    %c1_i32_23 = arith.constant 1 : i32
    %86 = arith.cmpi sge, %c1_i32_17, %c1_i32_23 : i32
    %c8_i32_24 = arith.constant 8 : i32
    %87 = arith.cmpi slt, %c1_i32_17, %c8_i32_24 : i32
    %88 = arith.andi %86, %87 : i1
    %89 = arith.select %88, %83, %48 : vector<1x32xf32>
    %90 = arith.select %88, %85, %49 : vector<1x32xf32>
    %c2_i32 = arith.constant 2 : i32
    %91 = tpu.concatenate %8, %75, %75, %90 in 1 : vector<1x32xf32>, vector<1x32xf32>, vector<1x32xf32>, vector<1x32xf32> -> vector<1x128xf32>
    %cst_25 = arith.constant dense<0.000000e+00> : vector<1x256xf32>
    %92 = tpu.matmul %91, %6, %cst_25 {dimension_numbers = #tpu.dot_dimension_numbers<[1], [0], [0], [1], [0, 0, 1, 1], [], []>} : vector<1x128xf32>, vector<128x256xf32>, vector<1x256xf32> -> vector<1x256xf32>
    %93 = arith.addf %92, %7 : vector<1x256xf32>
    %94 = arith.index_cast %c2_i32 : i32 to index
    %c0_26 = arith.constant 0 : index
    %95 = vector.load %arg6[%94, %c0_26] : memref<8x256xf32, #tpu.memory_space<vmem>>, vector<1x256xf32>
    %96 = arith.addf %93, %95 : vector<1x256xf32>
    %97 = arith.negf %96 : vector<1x256xf32>
    %98 = math.exp %97 : vector<1x256xf32>
    %cst_27 = arith.constant 1.000000e+00 : f32
    %99 = vector.broadcast %cst_27 : f32 to vector<1x256xf32>
    %100 = arith.addf %99, %98 : vector<1x256xf32>
    %101 = arith.divf %99, %100 : vector<1x256xf32>
    %102 = vector.extract_strided_slice %101 {offsets = [0, 0], sizes = [1, 32], strides = [1, 1]} : vector<1x256xf32> to vector<1x32xf32>
    %103 = vector.extract_strided_slice %101 {offsets = [0, 32], sizes = [1, 32], strides = [1, 1]} : vector<1x256xf32> to vector<1x32xf32>
    %104 = vector.extract_strided_slice %101 {offsets = [0, 96], sizes = [1, 32], strides = [1, 1]} : vector<1x256xf32> to vector<1x32xf32>
    %105 = vector.extract_strided_slice %96 {offsets = [0, 64], sizes = [1, 32], strides = [1, 1]} : vector<1x256xf32> to vector<1x32xf32>
    %106 = math.tanh %105 : vector<1x32xf32>
    %107 = arith.mulf %103, %74 : vector<1x32xf32>
    %108 = arith.mulf %102, %106 : vector<1x32xf32>
    %109 = arith.addf %107, %108 : vector<1x32xf32>
    %110 = math.tanh %109 : vector<1x32xf32>
    %111 = arith.mulf %104, %110 : vector<1x32xf32>
    %c0_i32_28 = arith.constant 0 : i32
    %112 = arith.cmpi sge, %c2_i32, %c0_i32_28 : i32
    %c7_i32_29 = arith.constant 7 : i32
    %113 = arith.cmpi slt, %c2_i32, %c7_i32_29 : i32
    %114 = arith.andi %112, %113 : i1
    %115 = arith.select %114, %109, %74 : vector<1x32xf32>
    %116 = arith.select %114, %111, %75 : vector<1x32xf32>
    %117 = vector.extract_strided_slice %101 {offsets = [0, 128], sizes = [1, 32], strides = [1, 1]} : vector<1x256xf32> to vector<1x32xf32>
    %118 = vector.extract_strided_slice %101 {offsets = [0, 160], sizes = [1, 32], strides = [1, 1]} : vector<1x256xf32> to vector<1x32xf32>
    %119 = vector.extract_strided_slice %101 {offsets = [0, 224], sizes = [1, 32], strides = [1, 1]} : vector<1x256xf32> to vector<1x32xf32>
    %120 = vector.extract_strided_slice %96 {offsets = [0, 192], sizes = [1, 32], strides = [1, 1]} : vector<1x256xf32> to vector<1x32xf32>
    %121 = math.tanh %120 : vector<1x32xf32>
    %122 = arith.mulf %118, %89 : vector<1x32xf32>
    %123 = arith.mulf %117, %121 : vector<1x32xf32>
    %124 = arith.addf %122, %123 : vector<1x32xf32>
    %125 = math.tanh %124 : vector<1x32xf32>
    %126 = arith.mulf %119, %125 : vector<1x32xf32>
    %c1_i32_30 = arith.constant 1 : i32
    %127 = arith.cmpi sge, %c2_i32, %c1_i32_30 : i32
    %c8_i32_31 = arith.constant 8 : i32
    %128 = arith.cmpi slt, %c2_i32, %c8_i32_31 : i32
    %129 = arith.andi %127, %128 : i1
    %130 = arith.select %129, %124, %89 : vector<1x32xf32>
    %131 = arith.select %129, %126, %90 : vector<1x32xf32>
    %c3_i32 = arith.constant 3 : i32
    %132 = tpu.concatenate %8, %116, %116, %131 in 1 : vector<1x32xf32>, vector<1x32xf32>, vector<1x32xf32>, vector<1x32xf32> -> vector<1x128xf32>
    %cst_32 = arith.constant dense<0.000000e+00> : vector<1x256xf32>
    %133 = tpu.matmul %132, %6, %cst_32 {dimension_numbers = #tpu.dot_dimension_numbers<[1], [0], [0], [1], [0, 0, 1, 1], [], []>} : vector<1x128xf32>, vector<128x256xf32>, vector<1x256xf32> -> vector<1x256xf32>
    %134 = arith.addf %133, %7 : vector<1x256xf32>
    %135 = arith.index_cast %c3_i32 : i32 to index
    %c0_33 = arith.constant 0 : index
    %136 = vector.load %arg6[%135, %c0_33] : memref<8x256xf32, #tpu.memory_space<vmem>>, vector<1x256xf32>
    %137 = arith.addf %134, %136 : vector<1x256xf32>
    %138 = arith.negf %137 : vector<1x256xf32>
    %139 = math.exp %138 : vector<1x256xf32>
    %cst_34 = arith.constant 1.000000e+00 : f32
    %140 = vector.broadcast %cst_34 : f32 to vector<1x256xf32>
    %141 = arith.addf %140, %139 : vector<1x256xf32>
    %142 = arith.divf %140, %141 : vector<1x256xf32>
    %143 = vector.extract_strided_slice %142 {offsets = [0, 0], sizes = [1, 32], strides = [1, 1]} : vector<1x256xf32> to vector<1x32xf32>
    %144 = vector.extract_strided_slice %142 {offsets = [0, 32], sizes = [1, 32], strides = [1, 1]} : vector<1x256xf32> to vector<1x32xf32>
    %145 = vector.extract_strided_slice %142 {offsets = [0, 96], sizes = [1, 32], strides = [1, 1]} : vector<1x256xf32> to vector<1x32xf32>
    %146 = vector.extract_strided_slice %137 {offsets = [0, 64], sizes = [1, 32], strides = [1, 1]} : vector<1x256xf32> to vector<1x32xf32>
    %147 = math.tanh %146 : vector<1x32xf32>
    %148 = arith.mulf %144, %115 : vector<1x32xf32>
    %149 = arith.mulf %143, %147 : vector<1x32xf32>
    %150 = arith.addf %148, %149 : vector<1x32xf32>
    %151 = math.tanh %150 : vector<1x32xf32>
    %152 = arith.mulf %145, %151 : vector<1x32xf32>
    %c0_i32_35 = arith.constant 0 : i32
    %153 = arith.cmpi sge, %c3_i32, %c0_i32_35 : i32
    %c7_i32_36 = arith.constant 7 : i32
    %154 = arith.cmpi slt, %c3_i32, %c7_i32_36 : i32
    %155 = arith.andi %153, %154 : i1
    %156 = arith.select %155, %150, %115 : vector<1x32xf32>
    %157 = arith.select %155, %152, %116 : vector<1x32xf32>
    %158 = vector.extract_strided_slice %142 {offsets = [0, 128], sizes = [1, 32], strides = [1, 1]} : vector<1x256xf32> to vector<1x32xf32>
    %159 = vector.extract_strided_slice %142 {offsets = [0, 160], sizes = [1, 32], strides = [1, 1]} : vector<1x256xf32> to vector<1x32xf32>
    %160 = vector.extract_strided_slice %142 {offsets = [0, 224], sizes = [1, 32], strides = [1, 1]} : vector<1x256xf32> to vector<1x32xf32>
    %161 = vector.extract_strided_slice %137 {offsets = [0, 192], sizes = [1, 32], strides = [1, 1]} : vector<1x256xf32> to vector<1x32xf32>
    %162 = math.tanh %161 : vector<1x32xf32>
    %163 = arith.mulf %159, %130 : vector<1x32xf32>
    %164 = arith.mulf %158, %162 : vector<1x32xf32>
    %165 = arith.addf %163, %164 : vector<1x32xf32>
    %166 = math.tanh %165 : vector<1x32xf32>
    %167 = arith.mulf %160, %166 : vector<1x32xf32>
    %c1_i32_37 = arith.constant 1 : i32
    %168 = arith.cmpi sge, %c3_i32, %c1_i32_37 : i32
    %c8_i32_38 = arith.constant 8 : i32
    %169 = arith.cmpi slt, %c3_i32, %c8_i32_38 : i32
    %170 = arith.andi %168, %169 : i1
    %171 = arith.select %170, %165, %130 : vector<1x32xf32>
    %172 = arith.select %170, %167, %131 : vector<1x32xf32>
    %c4_i32 = arith.constant 4 : i32
    %173 = tpu.concatenate %8, %157, %157, %172 in 1 : vector<1x32xf32>, vector<1x32xf32>, vector<1x32xf32>, vector<1x32xf32> -> vector<1x128xf32>
    %cst_39 = arith.constant dense<0.000000e+00> : vector<1x256xf32>
    %174 = tpu.matmul %173, %6, %cst_39 {dimension_numbers = #tpu.dot_dimension_numbers<[1], [0], [0], [1], [0, 0, 1, 1], [], []>} : vector<1x128xf32>, vector<128x256xf32>, vector<1x256xf32> -> vector<1x256xf32>
    %175 = arith.addf %174, %7 : vector<1x256xf32>
    %176 = arith.index_cast %c4_i32 : i32 to index
    %c0_40 = arith.constant 0 : index
    %177 = vector.load %arg6[%176, %c0_40] : memref<8x256xf32, #tpu.memory_space<vmem>>, vector<1x256xf32>
    %178 = arith.addf %175, %177 : vector<1x256xf32>
    %179 = arith.negf %178 : vector<1x256xf32>
    %180 = math.exp %179 : vector<1x256xf32>
    %cst_41 = arith.constant 1.000000e+00 : f32
    %181 = vector.broadcast %cst_41 : f32 to vector<1x256xf32>
    %182 = arith.addf %181, %180 : vector<1x256xf32>
    %183 = arith.divf %181, %182 : vector<1x256xf32>
    %184 = vector.extract_strided_slice %183 {offsets = [0, 0], sizes = [1, 32], strides = [1, 1]} : vector<1x256xf32> to vector<1x32xf32>
    %185 = vector.extract_strided_slice %183 {offsets = [0, 32], sizes = [1, 32], strides = [1, 1]} : vector<1x256xf32> to vector<1x32xf32>
    %186 = vector.extract_strided_slice %183 {offsets = [0, 96], sizes = [1, 32], strides = [1, 1]} : vector<1x256xf32> to vector<1x32xf32>
    %187 = vector.extract_strided_slice %178 {offsets = [0, 64], sizes = [1, 32], strides = [1, 1]} : vector<1x256xf32> to vector<1x32xf32>
    %188 = math.tanh %187 : vector<1x32xf32>
    %189 = arith.mulf %185, %156 : vector<1x32xf32>
    %190 = arith.mulf %184, %188 : vector<1x32xf32>
    %191 = arith.addf %189, %190 : vector<1x32xf32>
    %192 = math.tanh %191 : vector<1x32xf32>
    %193 = arith.mulf %186, %192 : vector<1x32xf32>
    %c0_i32_42 = arith.constant 0 : i32
    %194 = arith.cmpi sge, %c4_i32, %c0_i32_42 : i32
    %c7_i32_43 = arith.constant 7 : i32
    %195 = arith.cmpi slt, %c4_i32, %c7_i32_43 : i32
    %196 = arith.andi %194, %195 : i1
    %197 = arith.select %196, %191, %156 : vector<1x32xf32>
    %198 = arith.select %196, %193, %157 : vector<1x32xf32>
    %199 = vector.extract_strided_slice %183 {offsets = [0, 128], sizes = [1, 32], strides = [1, 1]} : vector<1x256xf32> to vector<1x32xf32>
    %200 = vector.extract_strided_slice %183 {offsets = [0, 160], sizes = [1, 32], strides = [1, 1]} : vector<1x256xf32> to vector<1x32xf32>
    %201 = vector.extract_strided_slice %183 {offsets = [0, 224], sizes = [1, 32], strides = [1, 1]} : vector<1x256xf32> to vector<1x32xf32>
    %202 = vector.extract_strided_slice %178 {offsets = [0, 192], sizes = [1, 32], strides = [1, 1]} : vector<1x256xf32> to vector<1x32xf32>
    %203 = math.tanh %202 : vector<1x32xf32>
    %204 = arith.mulf %200, %171 : vector<1x32xf32>
    %205 = arith.mulf %199, %203 : vector<1x32xf32>
    %206 = arith.addf %204, %205 : vector<1x32xf32>
    %207 = math.tanh %206 : vector<1x32xf32>
    %208 = arith.mulf %201, %207 : vector<1x32xf32>
    %c1_i32_44 = arith.constant 1 : i32
    %209 = arith.cmpi sge, %c4_i32, %c1_i32_44 : i32
    %c8_i32_45 = arith.constant 8 : i32
    %210 = arith.cmpi slt, %c4_i32, %c8_i32_45 : i32
    %211 = arith.andi %209, %210 : i1
    %212 = arith.select %211, %206, %171 : vector<1x32xf32>
    %213 = arith.select %211, %208, %172 : vector<1x32xf32>
    %c5_i32 = arith.constant 5 : i32
    %214 = tpu.concatenate %8, %198, %198, %213 in 1 : vector<1x32xf32>, vector<1x32xf32>, vector<1x32xf32>, vector<1x32xf32> -> vector<1x128xf32>
    %cst_46 = arith.constant dense<0.000000e+00> : vector<1x256xf32>
    %215 = tpu.matmul %214, %6, %cst_46 {dimension_numbers = #tpu.dot_dimension_numbers<[1], [0], [0], [1], [0, 0, 1, 1], [], []>} : vector<1x128xf32>, vector<128x256xf32>, vector<1x256xf32> -> vector<1x256xf32>
    %216 = arith.addf %215, %7 : vector<1x256xf32>
    %217 = arith.index_cast %c5_i32 : i32 to index
    %c0_47 = arith.constant 0 : index
    %218 = vector.load %arg6[%217, %c0_47] : memref<8x256xf32, #tpu.memory_space<vmem>>, vector<1x256xf32>
    %219 = arith.addf %216, %218 : vector<1x256xf32>
    %220 = arith.negf %219 : vector<1x256xf32>
    %221 = math.exp %220 : vector<1x256xf32>
    %cst_48 = arith.constant 1.000000e+00 : f32
    %222 = vector.broadcast %cst_48 : f32 to vector<1x256xf32>
    %223 = arith.addf %222, %221 : vector<1x256xf32>
    %224 = arith.divf %222, %223 : vector<1x256xf32>
    %225 = vector.extract_strided_slice %224 {offsets = [0, 0], sizes = [1, 32], strides = [1, 1]} : vector<1x256xf32> to vector<1x32xf32>
    %226 = vector.extract_strided_slice %224 {offsets = [0, 32], sizes = [1, 32], strides = [1, 1]} : vector<1x256xf32> to vector<1x32xf32>
    %227 = vector.extract_strided_slice %224 {offsets = [0, 96], sizes = [1, 32], strides = [1, 1]} : vector<1x256xf32> to vector<1x32xf32>
    %228 = vector.extract_strided_slice %219 {offsets = [0, 64], sizes = [1, 32], strides = [1, 1]} : vector<1x256xf32> to vector<1x32xf32>
    %229 = math.tanh %228 : vector<1x32xf32>
    %230 = arith.mulf %226, %197 : vector<1x32xf32>
    %231 = arith.mulf %225, %229 : vector<1x32xf32>
    %232 = arith.addf %230, %231 : vector<1x32xf32>
    %233 = math.tanh %232 : vector<1x32xf32>
    %234 = arith.mulf %227, %233 : vector<1x32xf32>
    %c0_i32_49 = arith.constant 0 : i32
    %235 = arith.cmpi sge, %c5_i32, %c0_i32_49 : i32
    %c7_i32_50 = arith.constant 7 : i32
    %236 = arith.cmpi slt, %c5_i32, %c7_i32_50 : i32
    %237 = arith.andi %235, %236 : i1
    %238 = arith.select %237, %232, %197 : vector<1x32xf32>
    %239 = arith.select %237, %234, %198 : vector<1x32xf32>
    %240 = vector.extract_strided_slice %224 {offsets = [0, 128], sizes = [1, 32], strides = [1, 1]} : vector<1x256xf32> to vector<1x32xf32>
    %241 = vector.extract_strided_slice %224 {offsets = [0, 160], sizes = [1, 32], strides = [1, 1]} : vector<1x256xf32> to vector<1x32xf32>
    %242 = vector.extract_strided_slice %224 {offsets = [0, 224], sizes = [1, 32], strides = [1, 1]} : vector<1x256xf32> to vector<1x32xf32>
    %243 = vector.extract_strided_slice %219 {offsets = [0, 192], sizes = [1, 32], strides = [1, 1]} : vector<1x256xf32> to vector<1x32xf32>
    %244 = math.tanh %243 : vector<1x32xf32>
    %245 = arith.mulf %241, %212 : vector<1x32xf32>
    %246 = arith.mulf %240, %244 : vector<1x32xf32>
    %247 = arith.addf %245, %246 : vector<1x32xf32>
    %248 = math.tanh %247 : vector<1x32xf32>
    %249 = arith.mulf %242, %248 : vector<1x32xf32>
    %c1_i32_51 = arith.constant 1 : i32
    %250 = arith.cmpi sge, %c5_i32, %c1_i32_51 : i32
    %c8_i32_52 = arith.constant 8 : i32
    %251 = arith.cmpi slt, %c5_i32, %c8_i32_52 : i32
    %252 = arith.andi %250, %251 : i1
    %253 = arith.select %252, %247, %212 : vector<1x32xf32>
    %254 = arith.select %252, %249, %213 : vector<1x32xf32>
    %c6_i32 = arith.constant 6 : i32
    %255 = tpu.concatenate %8, %239, %239, %254 in 1 : vector<1x32xf32>, vector<1x32xf32>, vector<1x32xf32>, vector<1x32xf32> -> vector<1x128xf32>
    %cst_53 = arith.constant dense<0.000000e+00> : vector<1x256xf32>
    %256 = tpu.matmul %255, %6, %cst_53 {dimension_numbers = #tpu.dot_dimension_numbers<[1], [0], [0], [1], [0, 0, 1, 1], [], []>} : vector<1x128xf32>, vector<128x256xf32>, vector<1x256xf32> -> vector<1x256xf32>
    %257 = arith.addf %256, %7 : vector<1x256xf32>
    %258 = arith.index_cast %c6_i32 : i32 to index
    %c0_54 = arith.constant 0 : index
    %259 = vector.load %arg6[%258, %c0_54] : memref<8x256xf32, #tpu.memory_space<vmem>>, vector<1x256xf32>
    %260 = arith.addf %257, %259 : vector<1x256xf32>
    %261 = arith.negf %260 : vector<1x256xf32>
    %262 = math.exp %261 : vector<1x256xf32>
    %cst_55 = arith.constant 1.000000e+00 : f32
    %263 = vector.broadcast %cst_55 : f32 to vector<1x256xf32>
    %264 = arith.addf %263, %262 : vector<1x256xf32>
    %265 = arith.divf %263, %264 : vector<1x256xf32>
    %266 = vector.extract_strided_slice %265 {offsets = [0, 0], sizes = [1, 32], strides = [1, 1]} : vector<1x256xf32> to vector<1x32xf32>
    %267 = vector.extract_strided_slice %265 {offsets = [0, 32], sizes = [1, 32], strides = [1, 1]} : vector<1x256xf32> to vector<1x32xf32>
    %268 = vector.extract_strided_slice %265 {offsets = [0, 96], sizes = [1, 32], strides = [1, 1]} : vector<1x256xf32> to vector<1x32xf32>
    %269 = vector.extract_strided_slice %260 {offsets = [0, 64], sizes = [1, 32], strides = [1, 1]} : vector<1x256xf32> to vector<1x32xf32>
    %270 = math.tanh %269 : vector<1x32xf32>
    %271 = arith.mulf %267, %238 : vector<1x32xf32>
    %272 = arith.mulf %266, %270 : vector<1x32xf32>
    %273 = arith.addf %271, %272 : vector<1x32xf32>
    %274 = math.tanh %273 : vector<1x32xf32>
    %275 = arith.mulf %268, %274 : vector<1x32xf32>
    %c0_i32_56 = arith.constant 0 : i32
    %276 = arith.cmpi sge, %c6_i32, %c0_i32_56 : i32
    %c7_i32_57 = arith.constant 7 : i32
    %277 = arith.cmpi slt, %c6_i32, %c7_i32_57 : i32
    %278 = arith.andi %276, %277 : i1
    %279 = arith.select %278, %273, %238 : vector<1x32xf32>
    %280 = arith.select %278, %275, %239 : vector<1x32xf32>
    %281 = vector.extract_strided_slice %265 {offsets = [0, 128], sizes = [1, 32], strides = [1, 1]} : vector<1x256xf32> to vector<1x32xf32>
    %282 = vector.extract_strided_slice %265 {offsets = [0, 160], sizes = [1, 32], strides = [1, 1]} : vector<1x256xf32> to vector<1x32xf32>
    %283 = vector.extract_strided_slice %265 {offsets = [0, 224], sizes = [1, 32], strides = [1, 1]} : vector<1x256xf32> to vector<1x32xf32>
    %284 = vector.extract_strided_slice %260 {offsets = [0, 192], sizes = [1, 32], strides = [1, 1]} : vector<1x256xf32> to vector<1x32xf32>
    %285 = math.tanh %284 : vector<1x32xf32>
    %286 = arith.mulf %282, %253 : vector<1x32xf32>
    %287 = arith.mulf %281, %285 : vector<1x32xf32>
    %288 = arith.addf %286, %287 : vector<1x32xf32>
    %289 = math.tanh %288 : vector<1x32xf32>
    %290 = arith.mulf %283, %289 : vector<1x32xf32>
    %c1_i32_58 = arith.constant 1 : i32
    %291 = arith.cmpi sge, %c6_i32, %c1_i32_58 : i32
    %c8_i32_59 = arith.constant 8 : i32
    %292 = arith.cmpi slt, %c6_i32, %c8_i32_59 : i32
    %293 = arith.andi %291, %292 : i1
    %294 = arith.select %293, %288, %253 : vector<1x32xf32>
    %295 = arith.select %293, %290, %254 : vector<1x32xf32>
    %c7_i32_60 = arith.constant 7 : i32
    %296 = tpu.concatenate %8, %280, %280, %295 in 1 : vector<1x32xf32>, vector<1x32xf32>, vector<1x32xf32>, vector<1x32xf32> -> vector<1x128xf32>
    %cst_61 = arith.constant dense<0.000000e+00> : vector<1x256xf32>
    %297 = tpu.matmul %296, %6, %cst_61 {dimension_numbers = #tpu.dot_dimension_numbers<[1], [0], [0], [1], [0, 0, 1, 1], [], []>} : vector<1x128xf32>, vector<128x256xf32>, vector<1x256xf32> -> vector<1x256xf32>
    %298 = arith.addf %297, %7 : vector<1x256xf32>
    %299 = arith.index_cast %c7_i32_60 : i32 to index
    %c0_62 = arith.constant 0 : index
    %300 = vector.load %arg6[%299, %c0_62] : memref<8x256xf32, #tpu.memory_space<vmem>>, vector<1x256xf32>
    %301 = arith.addf %298, %300 : vector<1x256xf32>
    %302 = arith.negf %301 : vector<1x256xf32>
    %303 = math.exp %302 : vector<1x256xf32>
    %cst_63 = arith.constant 1.000000e+00 : f32
    %304 = vector.broadcast %cst_63 : f32 to vector<1x256xf32>
    %305 = arith.addf %304, %303 : vector<1x256xf32>
    %306 = arith.divf %304, %305 : vector<1x256xf32>
    %307 = vector.extract_strided_slice %306 {offsets = [0, 0], sizes = [1, 32], strides = [1, 1]} : vector<1x256xf32> to vector<1x32xf32>
    %308 = vector.extract_strided_slice %306 {offsets = [0, 32], sizes = [1, 32], strides = [1, 1]} : vector<1x256xf32> to vector<1x32xf32>
    %309 = vector.extract_strided_slice %306 {offsets = [0, 96], sizes = [1, 32], strides = [1, 1]} : vector<1x256xf32> to vector<1x32xf32>
    %310 = vector.extract_strided_slice %301 {offsets = [0, 64], sizes = [1, 32], strides = [1, 1]} : vector<1x256xf32> to vector<1x32xf32>
    %311 = math.tanh %310 : vector<1x32xf32>
    %312 = arith.mulf %308, %279 : vector<1x32xf32>
    %313 = arith.mulf %307, %311 : vector<1x32xf32>
    %314 = arith.addf %312, %313 : vector<1x32xf32>
    %315 = math.tanh %314 : vector<1x32xf32>
    %316 = arith.mulf %309, %315 : vector<1x32xf32>
    %c0_i32_64 = arith.constant 0 : i32
    %317 = arith.cmpi sge, %c7_i32_60, %c0_i32_64 : i32
    %c7_i32_65 = arith.constant 7 : i32
    %318 = arith.cmpi slt, %c7_i32_60, %c7_i32_65 : i32
    %319 = arith.andi %317, %318 : i1
    %320 = arith.select %319, %314, %279 : vector<1x32xf32>
    %321 = arith.select %319, %316, %280 : vector<1x32xf32>
    %322 = vector.extract_strided_slice %306 {offsets = [0, 128], sizes = [1, 32], strides = [1, 1]} : vector<1x256xf32> to vector<1x32xf32>
    %323 = vector.extract_strided_slice %306 {offsets = [0, 160], sizes = [1, 32], strides = [1, 1]} : vector<1x256xf32> to vector<1x32xf32>
    %324 = vector.extract_strided_slice %306 {offsets = [0, 224], sizes = [1, 32], strides = [1, 1]} : vector<1x256xf32> to vector<1x32xf32>
    %325 = vector.extract_strided_slice %301 {offsets = [0, 192], sizes = [1, 32], strides = [1, 1]} : vector<1x256xf32> to vector<1x32xf32>
    %326 = math.tanh %325 : vector<1x32xf32>
    %327 = arith.mulf %323, %294 : vector<1x32xf32>
    %328 = arith.mulf %322, %326 : vector<1x32xf32>
    %329 = arith.addf %327, %328 : vector<1x32xf32>
    %330 = math.tanh %329 : vector<1x32xf32>
    %331 = arith.mulf %324, %330 : vector<1x32xf32>
    %c1_i32_66 = arith.constant 1 : i32
    %332 = arith.cmpi sge, %c7_i32_60, %c1_i32_66 : i32
    %c8_i32_67 = arith.constant 8 : i32
    %333 = arith.cmpi slt, %c7_i32_60, %c8_i32_67 : i32
    %334 = arith.andi %332, %333 : i1
    %335 = arith.select %334, %329, %294 : vector<1x32xf32>
    %336 = arith.select %334, %331, %295 : vector<1x32xf32>
    %c8_i32_68 = arith.constant 8 : i32
    %c0_69 = arith.constant 0 : index
    %c0_70 = arith.constant 0 : index
    %337 = vector.load %arg4[%c0_69, %c0_70] : memref<2x32xf32, #tpu.memory_space<vmem>>, vector<1x32xf32>
    tpu.vector_store %arg4[%c0_69, %c0_70], %321 {strides = array<i32>} : memref<2x32xf32, #tpu.memory_space<vmem>>, vector<1x32xf32>,
    %c0_71 = arith.constant 0 : index
    %c0_72 = arith.constant 0 : index
    %338 = vector.load %arg5[%c0_71, %c0_72] : memref<2x32xf32, #tpu.memory_space<vmem>>, vector<1x32xf32>
    tpu.vector_store %arg5[%c0_71, %c0_72], %320 {strides = array<i32>} : memref<2x32xf32, #tpu.memory_space<vmem>>, vector<1x32xf32>,
    %c1 = arith.constant 1 : index
    %c0_73 = arith.constant 0 : index
    %339 = vector.load %arg4[%c1, %c0_73] : memref<2x32xf32, #tpu.memory_space<vmem>>, vector<1x32xf32>
    tpu.vector_store %arg4[%c1, %c0_73], %336 {strides = array<i32>} : memref<2x32xf32, #tpu.memory_space<vmem>>, vector<1x32xf32>,
    %c1_74 = arith.constant 1 : index
    %c0_75 = arith.constant 0 : index
    %340 = vector.load %arg5[%c1_74, %c0_75] : memref<2x32xf32, #tpu.memory_space<vmem>>, vector<1x32xf32>
    tpu.vector_store %arg5[%c1_74, %c0_75], %335 {strides = array<i32>} : memref<2x32xf32, #tpu.memory_space<vmem>>, vector<1x32xf32>,
    return
  }
}

</mosaic_0001>

<bundles_post_ra>
// kernel: tpu_custom_call.1
= control target key start
LH: loop header
LB: loop body
LE: loop exit
PB: predicated region body
PF: predicated region fallthrough
CT: control target
= control target key end

     0   :  { %11 = vsyncpa [#allocation4], 0  ;;  %s2271_s0 = inlined_call_operand.hbm [shape: f32[7,8], index: 0, kind: input, shape index: {}]   ;;  %s2272_s1 = inlined_call_operand.hbm [shape: f32[8,128], index: 1, kind: input, shape index: {}]   ;;  %s2273_s2 = inlined_call_operand.hbm [shape: f32[128,256], index: 2, kind: input, shape index: {}]   ;;  %s2274_s3 = inlined_call_operand.vmem [shape: f32[1,256], index: 3, kind: input, shape index: {}]   ;;  %s2275_s4 = inlined_call_operand.hbm [shape: f32[2,32], index: 4, kind: output, shape index: {0}]   ;;  %s2276_s5 = inlined_call_operand.hbm [shape: f32[2,32], index: 5, kind: output, shape index: {1}]  }
   0x1   :  { %12 = vsyncpa [#allocation7], 0 }
   0x2   :  { %13 = vsyncpa [#allocation5], 0 }
   0x3   :  { %14 = vsyncpa [#allocation11], 0  ;;  %s1834_s18 = smov [#allocation6]   ;;  %s1835_s20 = smov [#allocation3]  }
   0x4   :  { %s31_s19 = sshll.u32 %s1834_s18, 4  ;;  %s21_s21 = sshll.u32 %s1835_s20, 4  ;;  %s32_s19 = int_to_ptr.vmem [resolvable:$true] %s31_s19  ;;  %s22_s21 = int_to_ptr.vmem [resolvable:$true] %s21_s21 }
   0x5   :  { %s1716_s24 = scalar_lea.hbm %s2272_s1, 128 }
   0x6   :  { %p1717_p0 = scmp.ne.s32.totalorder %s2272_s1, %s1716_s24  ;;  %p1720_p1 = scmp.lt.u32.totalorder %s1716_s24, %s2272_s1 }
   0x8   :  { %p1722_p2 = pnand %p1720_p1, %p1717_p0 }
   0xa   :  { %1725 = shalt.err (!%p1722_p2)
}
   0xb   :  { %s1726_s29 = scalar_lea.vmem %s32_s19, 128  ;;  %p1731_p4 = scmp.lt.s32.totalorder %s32_s19, %s32_s19 }
   0xc   :  { %p1727_p3 = scmp.ne.s32.totalorder %s32_s19, %s1726_s29  ;;  %p1732_p5 = scmp.lt.s32.totalorder %s1726_s29, %s1726_s29 }
   0xe   :  { %p1733_p6 = por %p1732_p5, %p1731_p4 }
  0x10   :  { %p1734_p7 = pnand %p1733_p6, %p1727_p3 }
  0x12   :  { %1737 = shalt.err (!%p1734_p7)
}
  0x13   :  { %34 = dma.hbm_to_vmem [thread:$0]  %s2272_s1, 128, %s32_s19, [#allocation7]  }
  0x14   :  { %s1738_s9 = scalar_lea.hbm %s2271_s0, 128 }
  0x15   :  { %p1739_p8 = scmp.ne.s32.totalorder %s2271_s0, %s1738_s9  ;;  %p1742_p9 = scmp.lt.u32.totalorder %s1738_s9, %s2271_s0 }
  0x17   :  { %p1744_p10 = pnand %p1742_p9, %p1739_p8 }
  0x19   :  { %1747 = shalt.err (!%p1744_p10)
}
  0x1a   :  { %s1748_s14 = scalar_lea.vmem %s22_s21, 128  ;;  %p1753_p12 = scmp.lt.s32.totalorder %s22_s21, %s22_s21 }
  0x1b   :  { %p1749_p11 = scmp.ne.s32.totalorder %s22_s21, %s1748_s14  ;;  %p1754_p13 = scmp.lt.s32.totalorder %s1748_s14, %s1748_s14 }
  0x1d   :  { %p1755_p0 = por %p1754_p13, %p1753_p12 }
  0x1f   :  { %p1756_p1 = pnand %p1755_p0, %p1749_p11 }
  0x21   :  { %1759 = shalt.err (!%p1756_p1)
}
  0x22   :  { %24 = dma.hbm_to_vmem [thread:$0]  %s2271_s0, 128, %s22_s21, [#allocation4]  }
  0x23   :  { %s1836_s16 = smov [#allocation8]   ;;  %s1760_s20 = scalar_lea.hbm %s2273_s2, 4096 }
  0x24   :  { %s40_s17 = sshll.u32 %s1836_s16, 4  ;;  %p1761_p2 = scmp.ne.s32.totalorder %s2273_s2, %s1760_s20  ;;  %s41_s17 = int_to_ptr.vmem [resolvable:$true] %s40_s17 }
  0x25   :  { %p1764_p3 = scmp.lt.u32.totalorder %s1760_s20, %s2273_s2 }
  0x27   :  { %p1766_p4 = pnand %p1764_p3, %p1761_p2 }
  0x29   :  { %1769 = shalt.err (!%p1766_p4)
}
  0x2a   :  { %s1770_s26 = scalar_lea.vmem %s41_s17, 4096  ;;  %p1775_p6 = scmp.lt.s32.totalorder %s41_s17, %s41_s17 }
  0x2b   :  { %p1771_p5 = scmp.ne.s32.totalorder %s41_s17, %s1770_s26  ;;  %p1776_p7 = scmp.lt.s32.totalorder %s1770_s26, %s1770_s26 }
  0x2d   :  { %p1777_p8 = por %p1776_p7, %p1775_p6 }
  0x2f   :  { %p1778_p9 = pnand %p1777_p8, %p1771_p5 }
  0x31   :  { %1781 = shalt.err (!%p1778_p9)
}
  0x32   :  { %s1837_s0 = smov 256   ;;  %s1838_s21 = smov 16  }
  0x33   :  { %46 = dma.hbm_to_vmem [thread:$0]  %s2273_s2, 4096, %s41_s17, [#allocation7], %s1837_s0, %s1837_s0, %s1838_s21  }
  0x34   :  { %1826 = dma.done.wait [#allocation4], 128  }
  0x35   :  { %1827 = vsyncadd [#allocation4], 4294967168 }
  0x36   :  { %1828 = dma.done.wait [#allocation7], 4224  }
  0x37   :  { %1829 = vsyncadd [#allocation7], 4294963072  ;;  %v1839_v0 = vmov 0.0   ;;  %vm1840_vm0 = vmmov 0   ;;  %v138_v1 = vld [vmem:[#allocation8 + $0x8] sm:$0xff]  ;;  %v140_v2 = vld [vmem:[#allocation8 + $0x18] sm:$0xff]  ;;  %v171_v53 = vlaneseq }
  0x38   :  { %1331 = vmatprep.subr.mxu0 %v1839_v0  ;;  %58 = vst [vmem:[#allocation2] sm:$0xff] %v1839_v0  ;;  %59 = vst [vmem:[#allocation2 + $0x8] sm:$0xff] %v1839_v0  ;;  %1333 = vmatprep.mubr.msk.f32.mxu0 %vm1840_vm0, %v1839_v0  ;;  %v137_v3 = vld [vmem:[#allocation8] sm:$0xff]  ;;  %v1917_v4 = vpack.c.bf16 %v140_v2, %v138_v1  ;;  %v139_v5 = vld [vmem:[#allocation8 + $0x10] sm:$0xff]  ;;  %vm62_vm1 = vcmask 64512   ;;  %s1841_s30 = smov 64  }
  0x39   :  { %245 = vmatprep.mubr.f32.mxu1 %v1839_v0  ;;  %v142_v6 = vld [vmem:[#allocation8 + $0x28] sm:$0xff]  ;;  %v144_v7 = vld [vmem:[#allocation8 + $0x38] sm:$0xff]  ;;  %v1919_v8 = vpack.c.bf16 %v139_v5, %v137_v3  ;;  %v141_v10 = vld [vmem:[#allocation8 + $0x20] sm:$0xff]  ;;  %v172_v54 = vshrl.u32 %v171_v53, 7  ;;  %s1843_s6 = smov 96   ;;  %vm290_vm2 = vcmask 261120  }
  0x3a   :  { %v1921_v9 = vpack.c.bf16 %v144_v7, %v142_v6  ;;  %v143_v11 = vld [vmem:[#allocation8 + $0x30] sm:$0xff]  ;;  %v146_v12 = vld [vmem:[#allocation8 + $0x48] sm:$0xff]  ;;  %1337 = vmatprep.subr.bf16.mxu1 %v1917_v4  ;;  %v148_v13 = vld [vmem:[#allocation8 + $0x58] sm:$0xff]  ;;  %vm292_vm3 = vcmask 523264   ;;  %vm294_vm4 = vcmask 785408   ;;  %vm1266_vm5 = vcmask 253952  }
  0x3b   :  { %1339 = vmatpush1.bf16.msra.mxu1 %v1919_v8  ;;  %v1925_v14 = vpack.c.bf16 %v143_v11, %v141_v10  ;;  %v1928_v15 = vpack.c.bf16 %v148_v13, %v146_v12  ;;  %v145_v16 = vld [vmem:[#allocation8 + $0x40] sm:$0xff]  ;;  %v147_v17 = vld [vmem:[#allocation8 + $0x50] sm:$0xff]  ;;  %v150_v18 = vld [vmem:[#allocation8 + $0x68] sm:$0xff]  ;;  %v2002_v55 = vsub.s32 0, %v172_v54  ;;  %s1844_s7 = smov [#allocation10]  }
  0x3c   :  { %1341 = vmatprep.subr.bf16.mxu1 %v1921_v9  ;;  %v152_v19 = vld [vmem:[#allocation8 + $0x78] sm:$0xff]  ;;  %v1931_v20 = vpack.c.bf16 %v147_v17, %v145_v16  ;;  %v60_v22 = vld [vmem:[#allocation3] sm:$0x7f]  ;;  %v149_v24 = vld [vmem:[#allocation8 + $0x60] sm:$0xff]  ;;  %s1299_s8 = sshll.u32 %s1844_s7, 4  ;;  %s1300_s8 = int_to_ptr.vmem [resolvable:$true] %s1299_s8 }
  0x3d   :  { %v61_v21 = vld [vmem:[#allocation6] sm:$0xff]  ;;  %v1934_v23 = vpack.c.bf16 %v152_v19, %v150_v18  ;;  %v151_v25 = vld [vmem:[#allocation8 + $0x70] sm:$0xff]  ;;  %v154_v26 = vld [vmem:[#allocation8 + $0x88] sm:$0xff]  ;;  %s1782_s9 = scalar_lea.vmem %s1300_s8, 32  ;;  %p1787_p11 = scmp.lt.s32.totalorder %s1300_s8, %s1300_s8 }
  0x3e   :  { %1332 = vmatpush3.msra.mxu0 %v61_v21  ;;  %v156_v27 = vld [vmem:[#allocation8 + $0x98] sm:$0xff]  ;;  %v1940_v28 = vpack.c.bf16 %v151_v25, %v149_v24  ;;  %v153_v30 = vld [vmem:[#allocation8 + $0x80] sm:$0xff]  ;;  %v155_v31 = vld [vmem:[#allocation8 + $0x90] sm:$0xff]  ;;  %v2040_v25 = vsub.s32 1, %v172_v54  ;;  %p1783_p10 = scmp.ne.s32.totalorder %s1300_s8, %s1782_s9  ;;  %p1788_p12 = scmp.lt.s32.totalorder %s1782_s9, %s1782_s9 }
  0x3f   :  { %1343 = vmatpush1.bf16.msra.mxu1 %v1925_v14  ;;  %1334 = vmatmul.mubr.msk.f32.vlgmr.msra.gmra.mrb[0].mxu0 %vm62_vm1, %v60_v22  ;;  %v1944_v29 = vpack.c.bf16 %v156_v27, %v154_v26  ;;  %v158_v32 = vld [vmem:[#allocation8 + $0xa8] sm:$0xff]  ;;  %v160_v33 = vld [vmem:[#allocation8 + $0xb8] sm:$0xff]  ;;  %v1948_v34 = vpack.c.bf16 %v155_v31, %v153_v30  ;;  %v157_v36 = vld [vmem:[#allocation8 + $0xa0] sm:$0xff] }
  0x40   :  { %1345 = vmatprep.subr.bf16.mxu1 %v1928_v15  ;;  %1369 = vmatprep.subr.bf16.mxu0 %v1917_v4  ;;  %v1952_v35 = vpack.c.bf16 %v160_v33, %v158_v32  ;;  %v159_v37 = vld [vmem:[#allocation8 + $0xb0] sm:$0xff]  ;;  %v162_v38 = vld [vmem:[#allocation8 + $0xc8] sm:$0xff]  ;;  %v164_v39 = vld [vmem:[#allocation8 + $0xd8] sm:$0xff]  ;;  %p1789_p13 = por %p1788_p12, %p1787_p11 }
  0x41   :  { %1371 = vmatpush1.bf16.msra.mxu0 %v1919_v8  ;;  %360 = vmatprep.mubr.f32.mxu0 %v1839_v0  ;;  %v1956_v40 = vpack.c.bf16 %v159_v37, %v157_v36  ;;  %v1960_v41 = vpack.c.bf16 %v164_v39, %v162_v38  ;;  %v161_v42 = vld [vmem:[#allocation8 + $0xc0] sm:$0xff]  ;;  %v163_v43 = vld [vmem:[#allocation8 + $0xd0] sm:$0xff]  ;;  %v166_v44 = vld [vmem:[#allocation8 + $0xe8] sm:$0xff] }
  0x42   :  { %1373 = vmatprep.subr.bf16.mxu0 %v1921_v9  ;;  %v168_v45 = vld [vmem:[#allocation8 + $0xf8] sm:$0xff]  ;;  %v1964_v46 = vpack.c.bf16 %v163_v43, %v161_v42  ;;  %v165_v48 = vld [vmem:[#allocation8 + $0xe0] sm:$0xff]  ;;  %v167_v49 = vld [vmem:[#allocation8 + $0xf0] sm:$0xff]  ;;  %p1790_p0 = pnand %p1789_p13, %p1783_p10 }
  0x43   :  { %1347 = vmatpush1.bf16.msra.mxu1 %v1931_v20  ;;  %v1968_v47 = vpack.c.bf16 %v168_v45, %v166_v44  ;;  %v1972_v50 = vpack.c.bf16 %v167_v49, %v165_v48  ;;  %v169_v56 = vld [vmem:[%s2274_s3] sm:$0x3]  ;;  %s1842_s3 = smov 32  }
  0x44   :  { %1349 = vmatprep.subr.bf16.mxu1 %v1934_v23  ;;  %v2008_v58 = vrot.slane %v169_v56, %v2002_v55  ;;  %v2043_v27 = vrot.slane %v169_v56, %v2040_v25 }
  0x45   :  { %1375 = vmatpush1.bf16.msra.mxu0 %v1925_v14 }
  0x46   :  { %1377 = vmatprep.subr.bf16.mxu0 %v1928_v15 }
  0x47   :  { %1351 = vmatpush1.bf16.msra.mxu1 %v1940_v28 }
  0x48   :  { %1353 = vmatprep.subr.bf16.mxu1 %v1944_v29 }
  0x49   :  { %1379 = vmatpush1.bf16.msra.mxu0 %v1931_v20 }
  0x4a   :  { %1381 = vmatprep.subr.bf16.mxu0 %v1934_v23 }
  0x4b   :  { %1355 = vmatpush1.bf16.msra.mxu1 %v1948_v34 }
  0x4c   :  { %1357 = vmatprep.subr.bf16.mxu1 %v1952_v35 }
  0x4d   :  { %1383 = vmatpush1.bf16.msra.mxu0 %v1940_v28 }
  0x4e   :  { %1385 = vmatprep.subr.bf16.mxu0 %v1944_v29 }
  0x4f   :  { %1359 = vmatpush1.bf16.msra.mxu1 %v1956_v40 }
  0x50   :  { %1361 = vmatprep.subr.bf16.mxu1 %v1960_v41 }
  0x51   :  { %1387 = vmatpush1.bf16.msra.mxu0 %v1948_v34 }
  0x52   :  { %1389 = vmatprep.subr.bf16.mxu0 %v1952_v35 }
  0x53   :  { %1363 = vmatpush1.bf16.msra.mxu1 %v1964_v46 }
  0x54   :  { %1365 = vmatprep.subr.bf16.mxu1 %v1968_v47 }
  0x55   :  { %1391 = vmatpush1.bf16.msra.mxu0 %v1956_v40 }
  0x56   :  { %1393 = vmatprep.subr.bf16.mxu0 %v1960_v41 }
  0x57   :  { %1367 = vmatpush1.bf16.msra.mxu1 %v1972_v50 }
  0x58   :  { %1401 = vmatprep.subr.bf16.mxu1 %v1917_v4 }
  0x59   :  { %1395 = vmatpush1.bf16.msra.mxu0 %v1964_v46 }
  0x5a   :  { %246 = vmatmul.mubr.f32.vlgmr.msra.gmra.mrb[0].mxu1 %v1839_v0  ;;  %1397 = vmatprep.subr.bf16.mxu0 %v1968_v47 }
  0x5b   :  { %1403 = vmatpush1.bf16.msra.mxu1 %v1919_v8  ;;  %504 = vmatprep.mubr.f32.mxu1 %v1839_v0 }
  0x5c   :  { %1405 = vmatprep.subr.bf16.mxu1 %v1921_v9 }
  0x5d   :  { %1399 = vmatpush1.bf16.msra.mxu0 %v1972_v50 }
  0x5e   :  { %1433 = vmatprep.subr.bf16.mxu0 %v1917_v4 }
  0x5f   :  { %1407 = vmatpush1.bf16.msra.mxu1 %v1925_v14 }
  0x60   :  { %1409 = vmatprep.subr.bf16.mxu1 %v1928_v15 }
  0x63   :  { %1411 = vmatpush1.bf16.msra.mxu1 %v1931_v20 }
  0x64   :  { %1413 = vmatprep.subr.bf16.mxu1 %v1934_v23 }
  0x67   :  { %1415 = vmatpush1.bf16.msra.mxu1 %v1940_v28 }
  0x68   :  { %1417 = vmatprep.subr.bf16.mxu1 %v1944_v29 }
  0x6b   :  { %1419 = vmatpush1.bf16.msra.mxu1 %v1948_v34 }
  0x6c   :  { %1421 = vmatprep.subr.bf16.mxu1 %v1952_v35 }
  0x6f   :  { %1423 = vmatpush1.bf16.msra.mxu1 %v1956_v40 }
  0x70   :  { %1425 = vmatprep.subr.bf16.mxu1 %v1960_v41 }
  0x73   :  { %1427 = vmatpush1.bf16.msra.mxu1 %v1964_v46 }
  0x74   :  { %1429 = vmatprep.subr.bf16.mxu1 %v1968_v47 }
  0x77   :  { %1431 = vmatpush1.bf16.msra.mxu1 %v1972_v50 }
  0x78   :  { %1465 = vmatprep.subr.bf16.mxu1 %v1917_v4 }
 0x112   :  { %v132_v51 = vpop.f32.mrb[0].mxu0 }
 0x113   :  { %136 = vst [vmem:[#allocation2] sm:$0x7f] %v132_v51  ;;  %v1335_v52 = vpop.f32.mrb[1].mxu0 }
 0x11a   :  { %v251_v57 = vld [vmem:[#allocation2] ss:$8 sm:$0x3]  ;;  %v368_v26 = vld [vmem:[#allocation2 + $0x1] ss:$8 sm:$0x3] }
 0x11b   :  { %v256_v59 = vrot.slane %v251_v57, %v2002_v55  ;;  %v373_v32 = vrot.slane %v368_v26, %v2002_v55  ;;  %v377_v38 = vrot.slane %v368_v26, %v2040_v25 }
 0x12d   :  { %v247_v60 = vpop.f32.mrb[0].mxu1 }
 0x12e   :  { %v248_v61 = vadd.f32 %v247_v60, %v2008_v58  ;;  %v249_v62 = vpop.f32.mrb[1].mxu1 }
 0x130   :  { %v258_v63 = vadd.f32 %v256_v59, %v248_v61 }
 0x132   :  { %1604 = vtanh.f32 %v258_v63  ;;  %v1314_v2 = vmul.f32 -1.442695, %v258_v63 }
 0x134   :  { %1606 = vpow2.f32 %v1314_v2 }
 0x13c   :  { %v1605_v1 = vpop.eup %1604 }
 0x13d   :  { %268 = vrot.lane.b32.xlu0 %v1605_v1, %s1841_s30 }
 0x13e   :  { %v1607_v3 = vpop.eup %1606 }
 0x13f   :  { %v262_v5 = vadd.f32 1.0, %v1607_v3 }
 0x141   :  { %1608 = vrcp.f32 %v262_v5 }
 0x14b   :  { %v1609_v6 = vpop.eup %1608 }
 0x14c   :  { %v266_v11 = vmul.f32 0.0, %v1609_v6 }
 0x1af   :  { %v269_v7 = vpop.permute.xlu0 %268 }
 0x1b0   :  { %v271_v10 = vmul.f32 %v1609_v6, %v269_v7 }
 0x1b2   :  { %273 = vrot.lane.b32.xlu0 %v271_v10, %s1842_s3 }
 0x224   :  { %v274_v12 = vpop.permute.xlu0 %273 }
 0x225   :  { %v2014_v13 = vadd.f32 %v274_v12, %v266_v11 }
 0x227   :  { %1610 = vtanh.f32 %v2014_v13 }
 0x231   :  { %v1611_v16 = vpop.eup %1610 }
 0x232   :  { %279 = vrot.lane.b32.xlu1 %v1611_v16, %s1841_s30 }
 0x2a4   :  { %v280_v17 = vpop.permute.xlu1 %279 }
 0x2a5   :  { %v282_v18 = vmul.f32 %v1609_v6, %v280_v17 }
 0x2a7   :  { %287 = vrot.lane.b32.xlu0 %v282_v18, %s1843_s6  ;;  %284 = vrot.lane.b32.xlu1 %v282_v18, %s1841_s30 }
 0x319   :  { %v288_v19 = vpop.permute.xlu0 %287  ;;  %v285_v21 = vpop.permute.xlu1 %284 }
 0x31a   :  { %v291_v22 = vsel %vm290_vm2, 0.0, %v285_v21  ;;  %v512_v21 = vld [vmem:[#allocation2 + $0x2] ss:$8 sm:$0x3] }
 0x31b   :  { %v293_v24 = vsel %vm292_vm3, %v291_v22, %v288_v19  ;;  %v517_v26 = vrot.slane %v512_v21, %v2002_v55 }
 0x31c   :  { %1315 = vmatmul.mubr.msk.f32.vlgmr.msra.gmra.mrb[2].mxu0 %vm294_vm4, %v293_v24 }
 0x31d   :  { %1435 = vmatpush1.bf16.msra.mxu0 %v1919_v8  ;;  %648 = vmatprep.mubr.f32.mxu0 %v1839_v0 }
 0x31e   :  { %1437 = vmatprep.subr.bf16.mxu0 %v1921_v9 }
 0x321   :  { %1439 = vmatpush1.bf16.msra.mxu0 %v1925_v14 }
 0x322   :  { %1441 = vmatprep.subr.bf16.mxu0 %v1928_v15 }
 0x325   :  { %1443 = vmatpush1.bf16.msra.mxu0 %v1931_v20 }
 0x326   :  { %1445 = vmatprep.subr.bf16.mxu0 %v1934_v23 }
 0x329   :  { %1447 = vmatpush1.bf16.msra.mxu0 %v1940_v28 }
 0x32a   :  { %1449 = vmatprep.subr.bf16.mxu0 %v1944_v29 }
 0x32d   :  { %1451 = vmatpush1.bf16.msra.mxu0 %v1948_v34 }
 0x32e   :  { %1453 = vmatprep.subr.bf16.mxu0 %v1952_v35 }
 0x331   :  { %1455 = vmatpush1.bf16.msra.mxu0 %v1956_v40 }
 0x332   :  { %1457 = vmatprep.subr.bf16.mxu0 %v1960_v41 }
 0x335   :  { %1459 = vmatpush1.bf16.msra.mxu0 %v1964_v46 }
 0x336   :  { %1461 = vmatprep.subr.bf16.mxu0 %v1968_v47 }
 0x339   :  { %1463 = vmatpush1.bf16.msra.mxu0 %v1972_v50 }
 0x33a   :  { %1497 = vmatprep.subr.bf16.mxu0 %v1917_v4 }
 0x3ef   :  { %v362_v30 = vpop.f32.mrb[2].mxu0 }
 0x3f0   :  { %v363_v31 = vadd.f32 %v362_v30, %v2008_v58  ;;  %v364_v33 = vpop.f32.mrb[3].mxu0 }
 0x3f1   :  { %v365_v36 = vadd.f32 %v364_v33, %v2043_v27  ;;  %v521_v33 = vrot.slane %v512_v21, %v2040_v25 }
 0x3f2   :  { %v380_v37 = vadd.f32 %v373_v32, %v363_v31 }
 0x3f3   :  { %v381_v39 = vadd.f32 %v377_v38, %v365_v36 }
 0x3f4   :  { %1612 = vtanh.f32 %v380_v37  ;;  %v1316_v44 = vmul.f32 -1.442695, %v380_v37 }
 0x3f5   :  { %1614 = vtanh.f32 %v381_v39  ;;  %v1317_v45 = vmul.f32 -1.442695, %v381_v39 }
 0x3f6   :  { %1616 = vpow2.f32 %v1316_v44 }
 0x3f7   :  { %1618 = vpow2.f32 %v1317_v45 }
 0x3fe   :  { %v1613_v42 = vpop.eup %1612 }
 0x3ff   :  { %397 = vrot.lane.b32.xlu1 %v1613_v42, %s1841_s30  ;;  %v1615_v43 = vpop.eup %1614 }
 0x400   :  { %v1617_v48 = vpop.eup %1616 }
 0x401   :  { %v388_v49 = vadd.f32 1.0, %v1617_v48  ;;  %v1619_v51 = vpop.eup %1618 }
 0x402   :  { %v389_v52 = vadd.f32 1.0, %v1619_v51 }
 0x403   :  { %415 = vrot.lane.b32.xlu1 %v1615_v43, %s1841_s30  ;;  %1620 = vrcp.f32 %v388_v49 }
 0x404   :  { %1622 = vrcp.f32 %v389_v52 }
 0x40d   :  { %v1621_v53 = vpop.eup %1620 }
 0x40e   :  { %v1623_v57 = vpop.eup %1622  ;;  %v395_v61 = vmul.f32 %v1621_v53, %v2014_v13 }
 0x40f   :  { %v413_v1 = vmul.f32 0.0, %v1623_v57 }
 0x471   :  { %v398_v54 = vpop.permute.xlu1 %397 }
 0x472   :  { %v400_v56 = vmul.f32 %v1621_v53, %v398_v54 }
 0x474   :  { %402 = vrot.lane.b32.xlu0 %v400_v56, %s1842_s3 }
 0x475   :  { %v416_v59 = vpop.permute.xlu1 %415 }
 0x476   :  { %v418_v60 = vmul.f32 %v1623_v57, %v416_v59 }
 0x478   :  { %420 = vrot.lane.b32.xlu0 %v418_v60, %s1842_s3 }
 0x4e6   :  { %v403_v62 = vpop.permute.xlu0 %402 }
 0x4e7   :  { %v2054_v63 = vadd.f32 %v403_v62, %v395_v61 }
 0x4e9   :  { %1624 = vtanh.f32 %v2054_v63 }
 0x4ea   :  { %v421_v2 = vpop.permute.xlu0 %420 }
 0x4eb   :  { %v2057_v3 = vadd.f32 %v421_v2, %v413_v1 }
 0x4ed   :  { %1626 = vtanh.f32 %v2057_v3 }
 0x4f3   :  { %v1625_v5 = vpop.eup %1624 }
 0x4f4   :  { %408 = vrot.lane.b32.xlu1 %v1625_v5, %s1841_s30 }
 0x4f7   :  { %v1627_v6 = vpop.eup %1626 }
 0x4f8   :  { %426 = vrot.lane.b32.xlu0 %v1627_v6, %s1841_s30 }
 0x566   :  { %v409_v7 = vpop.permute.xlu1 %408 }
 0x567   :  { %v411_v10 = vmul.f32 %v1621_v53, %v409_v7 }
 0x569   :  { %434 = vrot.lane.b32.xlu0 %v411_v10, %s1843_s6  ;;  %431 = vrot.lane.b32.xlu1 %v411_v10, %s1841_s30 }
 0x56a   :  { %v427_v11 = vpop.permute.xlu0 %426 }
 0x56b   :  { %v429_v16 = vmul.f32 %v1623_v57, %v427_v11 }
 0x5db   :  { %v435_v12 = vpop.permute.xlu0 %434  ;;  %v432_v13 = vpop.permute.xlu1 %431 }
 0x5dc   :  { %v437_v17 = vsel %vm290_vm2, 0.0, %v432_v13 }
 0x5dd   :  { %v438_v18 = vsel %vm292_vm3, %v437_v17, %v435_v12  ;;  %v656_v17 = vld [vmem:[#allocation2 + $0x3] ss:$8 sm:$0x3] }
 0x5de   :  { %v439_v19 = vsel %vm294_vm4, %v438_v18, %v429_v16  ;;  %v661_v21 = vrot.slane %v656_v17, %v2002_v55 }
 0x5df   :  { %505 = vmatmul.mubr.f32.vlgmr.msra.gmra.mrb[2].mxu1 %v439_v19 }
 0x5e0   :  { %1467 = vmatpush1.bf16.msra.mxu1 %v1919_v8  ;;  %792 = vmatprep.mubr.f32.mxu1 %v1839_v0 }
 0x5e1   :  { %1469 = vmatprep.subr.bf16.mxu1 %v1921_v9 }
 0x5e4   :  { %1471 = vmatpush1.bf16.msra.mxu1 %v1925_v14 }
 0x5e5   :  { %1473 = vmatprep.subr.bf16.mxu1 %v1928_v15 }
 0x5e8   :  { %1475 = vmatpush1.bf16.msra.mxu1 %v1931_v20 }
 0x5e9   :  { %1477 = vmatprep.subr.bf16.mxu1 %v1934_v23 }
 0x5ec   :  { %1479 = vmatpush1.bf16.msra.mxu1 %v1940_v28 }
 0x5ed   :  { %1481 = vmatprep.subr.bf16.mxu1 %v1944_v29 }
 0x5f0   :  { %1483 = vmatpush1.bf16.msra.mxu1 %v1948_v34 }
 0x5f1   :  { %1485 = vmatprep.subr.bf16.mxu1 %v1952_v35 }
 0x5f4   :  { %1487 = vmatpush1.bf16.msra.mxu1 %v1956_v40 }
 0x5f5   :  { %1489 = vmatprep.subr.bf16.mxu1 %v1960_v41 }
 0x5f8   :  { %1491 = vmatpush1.bf16.msra.mxu1 %v1964_v46 }
 0x5f9   :  { %1493 = vmatprep.subr.bf16.mxu1 %v1968_v47 }
 0x5fc   :  { %1495 = vmatpush1.bf16.msra.mxu1 %v1972_v50 }
 0x5fd   :  { %1529 = vmatprep.subr.bf16.mxu1 %v1917_v4 }
 0x6b2   :  { %v506_v22 = vpop.f32.mrb[2].mxu1 }
 0x6b3   :  { %v507_v24 = vadd.f32 %v506_v22, %v2008_v58  ;;  %v508_v30 = vpop.f32.mrb[3].mxu1 }
 0x6b4   :  { %v509_v31 = vadd.f32 %v508_v30, %v2043_v27  ;;  %v665_v30 = vrot.slane %v656_v17, %v2040_v25 }
 0x6b5   :  { %v524_v32 = vadd.f32 %v517_v26, %v507_v24 }
 0x6b6   :  { %v525_v36 = vadd.f32 %v521_v33, %v509_v31 }
 0x6b7   :  { %1628 = vtanh.f32 %v524_v32  ;;  %v1318_v39 = vmul.f32 -1.442695, %v524_v32 }
 0x6b8   :  { %1630 = vtanh.f32 %v525_v36  ;;  %v1319_v42 = vmul.f32 -1.442695, %v525_v36 }
 0x6b9   :  { %1632 = vpow2.f32 %v1318_v39 }
 0x6ba   :  { %1634 = vpow2.f32 %v1319_v42 }
 0x6c1   :  { %v1629_v37 = vpop.eup %1628 }
 0x6c2   :  { %541 = vrot.lane.b32.xlu1 %v1629_v37, %s1841_s30  ;;  %v1631_v38 = vpop.eup %1630 }
 0x6c3   :  { %v1633_v43 = vpop.eup %1632 }
 0x6c4   :  { %v532_v44 = vadd.f32 1.0, %v1633_v43  ;;  %v1635_v45 = vpop.eup %1634 }
 0x6c5   :  { %v533_v48 = vadd.f32 1.0, %v1635_v45 }
 0x6c6   :  { %559 = vrot.lane.b32.xlu1 %v1631_v38, %s1841_s30  ;;  %1636 = vrcp.f32 %v532_v44 }
 0x6c7   :  { %1638 = vrcp.f32 %v533_v48 }
 0x6d0   :  { %v1637_v49 = vpop.eup %1636 }
 0x6d1   :  { %v1639_v53 = vpop.eup %1638  ;;  %v539_v57 = vmul.f32 %v1637_v49, %v2054_v63 }
 0x6d2   :  { %v557_v61 = vmul.f32 %v1639_v53, %v2057_v3 }
 0x734   :  { %v542_v51 = vpop.permute.xlu1 %541 }
 0x735   :  { %v544_v52 = vmul.f32 %v1637_v49, %v542_v51 }
 0x737   :  { %546 = vrot.lane.b32.xlu0 %v544_v52, %s1842_s3 }
 0x738   :  { %v560_v54 = vpop.permute.xlu1 %559 }
 0x739   :  { %v562_v56 = vmul.f32 %v1639_v53, %v560_v54 }
 0x73b   :  { %564 = vrot.lane.b32.xlu0 %v562_v56, %s1842_s3 }
 0x7a9   :  { %v547_v59 = vpop.permute.xlu0 %546 }
 0x7aa   :  { %v2093_v60 = vadd.f32 %v547_v59, %v539_v57 }
 0x7ac   :  { %1640 = vtanh.f32 %v2093_v60 }
 0x7ad   :  { %v565_v62 = vpop.permute.xlu0 %564 }
 0x7ae   :  { %v2097_v1 = vadd.f32 %v565_v62, %v557_v61 }
 0x7b0   :  { %1642 = vtanh.f32 %v2097_v1 }
 0x7b6   :  { %v1641_v2 = vpop.eup %1640 }
 0x7b7   :  { %552 = vrot.lane.b32.xlu1 %v1641_v2, %s1841_s30 }
 0x7ba   :  { %v1643_v5 = vpop.eup %1642 }
 0x7bb   :  { %570 = vrot.lane.b32.xlu0 %v1643_v5, %s1841_s30 }
 0x829   :  { %v553_v6 = vpop.permute.xlu1 %552 }
 0x82a   :  { %v555_v63 = vmul.f32 %v1637_v49, %v553_v6 }
 0x82c   :  { %578 = vrot.lane.b32.xlu0 %v555_v63, %s1843_s6  ;;  %575 = vrot.lane.b32.xlu1 %v555_v63, %s1841_s30 }
 0x82d   :  { %v571_v7 = vpop.permute.xlu0 %570 }
 0x82e   :  { %v573_v11 = vmul.f32 %v1639_v53, %v571_v7 }
 0x89e   :  { %v579_v10 = vpop.permute.xlu0 %578  ;;  %v576_v3 = vpop.permute.xlu1 %575 }
 0x89f   :  { %v581_v12 = vsel %vm290_vm2, 0.0, %v576_v3 }
 0x8a0   :  { %v582_v13 = vsel %vm292_vm3, %v581_v12, %v579_v10 }
 0x8a1   :  { %v583_v16 = vsel %vm294_vm4, %v582_v13, %v573_v11  ;;  %v800_v11 = vld [vmem:[#allocation2 + $0x4] ss:$8 sm:$0x3] }
 0x8a2   :  { %649 = vmatmul.mubr.f32.vlgmr.msra.gmra.mrb[4].mxu0 %v583_v16  ;;  %v805_v16 = vrot.slane %v800_v11, %v2002_v55 }
 0x8a3   :  { %1499 = vmatpush1.bf16.msra.mxu0 %v1919_v8  ;;  %936 = vmatprep.mubr.f32.mxu0 %v1839_v0 }
 0x8a4   :  { %1501 = vmatprep.subr.bf16.mxu0 %v1921_v9 }
 0x8a7   :  { %1503 = vmatpush1.bf16.msra.mxu0 %v1925_v14 }
 0x8a8   :  { %1505 = vmatprep.subr.bf16.mxu0 %v1928_v15 }
 0x8ab   :  { %1507 = vmatpush1.bf16.msra.mxu0 %v1931_v20 }
 0x8ac   :  { %1509 = vmatprep.subr.bf16.mxu0 %v1934_v23 }
 0x8af   :  { %1511 = vmatpush1.bf16.msra.mxu0 %v1940_v28 }
 0x8b0   :  { %1513 = vmatprep.subr.bf16.mxu0 %v1944_v29 }
 0x8b3   :  { %1515 = vmatpush1.bf16.msra.mxu0 %v1948_v34 }
 0x8b4   :  { %1517 = vmatprep.subr.bf16.mxu0 %v1952_v35 }
 0x8b7   :  { %1519 = vmatpush1.bf16.msra.mxu0 %v1956_v40 }
 0x8b8   :  { %1521 = vmatprep.subr.bf16.mxu0 %v1960_v41 }
 0x8bb   :  { %1523 = vmatpush1.bf16.msra.mxu0 %v1964_v46 }
 0x8bc   :  { %1525 = vmatprep.subr.bf16.mxu0 %v1968_v47 }
 0x8bf   :  { %1527 = vmatpush1.bf16.msra.mxu0 %v1972_v50 }
 0x8c0   :  { %1561 = vmatprep.subr.bf16.mxu0 %v1917_v4 }
 0x975   :  { %v650_v18 = vpop.f32.mrb[4].mxu0 }
 0x976   :  { %v651_v19 = vadd.f32 %v650_v18, %v2008_v58  ;;  %v652_v22 = vpop.f32.mrb[5].mxu0 }
 0x977   :  { %v653_v24 = vadd.f32 %v652_v22, %v2043_v27 }
 0x978   :  { %v668_v26 = vadd.f32 %v661_v21, %v651_v19  ;;  %v809_v21 = vrot.slane %v800_v11, %v2040_v25 }
 0x979   :  { %v669_v31 = vadd.f32 %v665_v30, %v653_v24 }
 0x97a   :  { %1644 = vtanh.f32 %v668_v26  ;;  %v1320_v4 = vmul.f32 -1.442695, %v668_v26 }
 0x97b   :  { %1646 = vtanh.f32 %v669_v31  ;;  %v1321_v36 = vmul.f32 -1.442695, %v669_v31 }
 0x97c   :  { %1648 = vpow2.f32 %v1320_v4 }
 0x97d   :  { %1650 = vpow2.f32 %v1321_v36 }
 0x984   :  { %v1645_v32 = vpop.eup %1644 }
 0x985   :  { %685 = vrot.lane.b32.xlu1 %v1645_v32, %s1841_s30  ;;  %v1647_v33 = vpop.eup %1646 }
 0x986   :  { %v1649_v37 = vpop.eup %1648 }
 0x987   :  { %v676_v38 = vadd.f32 1.0, %v1649_v37  ;;  %v1651_v39 = vpop.eup %1650 }
 0x988   :  { %v677_v42 = vadd.f32 1.0, %v1651_v39 }
 0x989   :  { %703 = vrot.lane.b32.xlu1 %v1647_v33, %s1841_s30  ;;  %1652 = vrcp.f32 %v676_v38 }
 0x98a   :  { %1654 = vrcp.f32 %v677_v42 }
 0x993   :  { %v1653_v43 = vpop.eup %1652 }
 0x994   :  { %v1655_v48 = vpop.eup %1654  ;;  %v683_v52 = vmul.f32 %v1653_v43, %v2093_v60 }
 0x995   :  { %v701_v56 = vmul.f32 %v1655_v48, %v2097_v1 }
 0x9f7   :  { %v686_v44 = vpop.permute.xlu1 %685 }
 0x9f8   :  { %v688_v45 = vmul.f32 %v1653_v43, %v686_v44 }
 0x9fa   :  { %690 = vrot.lane.b32.xlu0 %v688_v45, %s1842_s3 }
 0x9fb   :  { %v704_v49 = vpop.permute.xlu1 %703 }
 0x9fc   :  { %v706_v51 = vmul.f32 %v1655_v48, %v704_v49 }
 0x9fe   :  { %708 = vrot.lane.b32.xlu0 %v706_v51, %s1842_s3 }
 0xa6c   :  { %v691_v53 = vpop.permute.xlu0 %690 }
 0xa6d   :  { %v2133_v54 = vadd.f32 %v691_v53, %v683_v52 }
 0xa6f   :  { %1656 = vtanh.f32 %v2133_v54 }
 0xa70   :  { %v709_v57 = vpop.permute.xlu0 %708 }
 0xa71   :  { %v2137_v59 = vadd.f32 %v709_v57, %v701_v56 }
 0xa73   :  { %1658 = vtanh.f32 %v2137_v59 }
 0xa79   :  { %v1657_v61 = vpop.eup %1656 }
 0xa7a   :  { %696 = vrot.lane.b32.xlu1 %v1657_v61, %s1841_s30 }
 0xa7d   :  { %v1659_v62 = vpop.eup %1658 }
 0xa7e   :  { %714 = vrot.lane.b32.xlu0 %v1659_v62, %s1841_s30 }
 0xaec   :  { %v697_v2 = vpop.permute.xlu1 %696 }
 0xaed   :  { %v699_v60 = vmul.f32 %v1653_v43, %v697_v2 }
 0xaef   :  { %722 = vrot.lane.b32.xlu0 %v699_v60, %s1843_s6  ;;  %719 = vrot.lane.b32.xlu1 %v699_v60, %s1841_s30 }
 0xaf0   :  { %v715_v5 = vpop.permute.xlu0 %714 }
 0xaf1   :  { %v717_v63 = vmul.f32 %v1655_v48, %v715_v5 }
 0xb61   :  { %v723_v6 = vpop.permute.xlu0 %722  ;;  %v720_v1 = vpop.permute.xlu1 %719 }
 0xb62   :  { %v725_v7 = vsel %vm290_vm2, 0.0, %v720_v1 }
 0xb63   :  { %v726_v10 = vsel %vm292_vm3, %v725_v7, %v723_v6 }
 0xb64   :  { %v727_v3 = vsel %vm294_vm4, %v726_v10, %v717_v63 }
 0xb65   :  { %793 = vmatmul.mubr.f32.vlgmr.msra.gmra.mrb[4].mxu1 %v727_v3 }
 0xb66   :  { %1531 = vmatpush1.bf16.msra.mxu1 %v1919_v8  ;;  %1080 = vmatprep.mubr.f32.mxu1 %v1839_v0 }
 0xb67   :  { %1533 = vmatprep.subr.bf16.mxu1 %v1921_v9 }
 0xb6a   :  { %1535 = vmatpush1.bf16.msra.mxu1 %v1925_v14 }
 0xb6b   :  { %1537 = vmatprep.subr.bf16.mxu1 %v1928_v15 }
 0xb6e   :  { %1539 = vmatpush1.bf16.msra.mxu1 %v1931_v20 }
 0xb6f   :  { %1541 = vmatprep.subr.bf16.mxu1 %v1934_v23 }
 0xb72   :  { %1543 = vmatpush1.bf16.msra.mxu1 %v1940_v28 }
 0xb73   :  { %1545 = vmatprep.subr.bf16.mxu1 %v1944_v29 }
 0xb76   :  { %1547 = vmatpush1.bf16.msra.mxu1 %v1948_v34 }
 0xb77   :  { %1549 = vmatprep.subr.bf16.mxu1 %v1952_v35 }
 0xb7a   :  { %1551 = vmatpush1.bf16.msra.mxu1 %v1956_v40 }
 0xb7b   :  { %1553 = vmatprep.subr.bf16.mxu1 %v1960_v41 }
 0xb7e   :  { %1555 = vmatpush1.bf16.msra.mxu1 %v1964_v46 }
 0xb7f   :  { %1557 = vmatprep.subr.bf16.mxu1 %v1968_v47 }
 0xb82   :  { %1559 = vmatpush1.bf16.msra.mxu1 %v1972_v50 }
 0xc38   :  { %v794_v12 = vpop.f32.mrb[4].mxu1 }
 0xc39   :  { %v795_v13 = vadd.f32 %v794_v12, %v2008_v58  ;;  %v796_v17 = vpop.f32.mrb[5].mxu1 }
 0xc3a   :  { %v797_v18 = vadd.f32 %v796_v17, %v2043_v27 }
 0xc3b   :  { %v812_v19 = vadd.f32 %v805_v16, %v795_v13 }
 0xc3c   :  { %v813_v22 = vadd.f32 %v809_v21, %v797_v18 }
 0xc3d   :  { %1660 = vtanh.f32 %v812_v19  ;;  %v1322_v30 = vmul.f32 -1.442695, %v812_v19 }
 0xc3e   :  { %1662 = vtanh.f32 %v813_v22  ;;  %v1323_v31 = vmul.f32 -1.442695, %v813_v22 }
 0xc3f   :  { %1664 = vpow2.f32 %v1322_v30 }
 0xc40   :  { %1666 = vpow2.f32 %v1323_v31 }
 0xc47   :  { %v1661_v24 = vpop.eup %1660 }
 0xc48   :  { %829 = vrot.lane.b32.xlu1 %v1661_v24, %s1841_s30  ;;  %v1663_v26 = vpop.eup %1662 }
 0xc49   :  { %v1665_v32 = vpop.eup %1664 }
 0xc4a   :  { %v820_v33 = vadd.f32 1.0, %v1665_v32  ;;  %v1667_v4 = vpop.eup %1666 }
 0xc4b   :  { %v821_v36 = vadd.f32 1.0, %v1667_v4 }
 0xc4c   :  { %847 = vrot.lane.b32.xlu1 %v1663_v26, %s1841_s30  ;;  %1668 = vrcp.f32 %v820_v33 }
 0xc4d   :  { %1670 = vrcp.f32 %v821_v36 }
 0xc56   :  { %v1669_v37 = vpop.eup %1668 }
 0xc57   :  { %v1671_v42 = vpop.eup %1670  ;;  %v827_v45 = vmul.f32 %v1669_v37, %v2133_v54 }
 0xc58   :  { %v845_v51 = vmul.f32 %v1671_v42, %v2137_v59 }
 0xcba   :  { %v830_v38 = vpop.permute.xlu1 %829 }
 0xcbb   :  { %v832_v39 = vmul.f32 %v1669_v37, %v830_v38 }
 0xcbd   :  { %834 = vrot.lane.b32.xlu0 %v832_v39, %s1842_s3 }
 0xcbe   :  { %v848_v43 = vpop.permute.xlu1 %847 }
 0xcbf   :  { %v850_v44 = vmul.f32 %v1671_v42, %v848_v43 }
 0xcc1   :  { %852 = vrot.lane.b32.xlu0 %v850_v44, %s1842_s3 }
 0xd2f   :  { %v835_v48 = vpop.permute.xlu0 %834 }
 0xd30   :  { %v2172_v49 = vadd.f32 %v835_v48, %v827_v45 }
 0xd32   :  { %1672 = vtanh.f32 %v2172_v49 }
 0xd33   :  { %v853_v52 = vpop.permute.xlu0 %852 }
 0xd34   :  { %v2176_v53 = vadd.f32 %v853_v52, %v845_v51 }
 0xd36   :  { %1674 = vtanh.f32 %v2176_v53 }
 0xd3c   :  { %v1673_v56 = vpop.eup %1672 }
 0xd3d   :  { %840 = vrot.lane.b32.xlu1 %v1673_v56, %s1841_s30 }
 0xd40   :  { %v1675_v57 = vpop.eup %1674 }
 0xd41   :  { %858 = vrot.lane.b32.xlu0 %v1675_v57, %s1841_s30 }
 0xdaf   :  { %v841_v61 = vpop.permute.xlu1 %840 }
 0xdb0   :  { %v843_v54 = vmul.f32 %v1669_v37, %v841_v61 }
 0xdb2   :  { %866 = vrot.lane.b32.xlu0 %v843_v54, %s1843_s6  ;;  %863 = vrot.lane.b32.xlu1 %v843_v54, %s1841_s30 }
 0xdb3   :  { %v859_v62 = vpop.permute.xlu0 %858 }
 0xdb4   :  { %v861_v60 = vmul.f32 %v1671_v42, %v859_v62  ;;  %v1088_v42 = vld [vmem:[#allocation2 + $0x6] ss:$8 sm:$0x3] }
 0xdb5   :  { %v1093_v45 = vrot.slane %v1088_v42, %v2002_v55  ;;  %v1097_v52 = vrot.slane %v1088_v42, %v2040_v25 }
 0xe24   :  { %v867_v2 = vpop.permute.xlu0 %866  ;;  %v864_v59 = vpop.permute.xlu1 %863 }
 0xe25   :  { %v869_v5 = vsel %vm290_vm2, 0.0, %v864_v59 }
 0xe26   :  { %v870_v6 = vsel %vm292_vm3, %v869_v5, %v867_v2 }
 0xe27   :  { %v871_v1 = vsel %vm294_vm4, %v870_v6, %v861_v60 }
 0xe28   :  { %937 = vmatmul.mubr.f32.vlgmr.msra.gmra.mrb[6].mxu0 %v871_v1 }
 0xe29   :  { %1563 = vmatpush1.bf16.msra.mxu0 %v1919_v8  ;;  %1224 = vmatprep.mubr.f32.mxu0 %v1839_v0  ;;  %v944_v0 = vld [vmem:[#allocation2 + $0x5] ss:$8 sm:$0x3] }
 0xe2a   :  { %1565 = vmatprep.subr.bf16.mxu0 %v1921_v9 }
 0xe2d   :  { %1567 = vmatpush1.bf16.msra.mxu0 %v1925_v14  ;;  %v949_v14 = vrot.slane %v944_v0, %v2002_v55 }
 0xe2e   :  { %1569 = vmatprep.subr.bf16.mxu0 %v1928_v15 }
 0xe31   :  { %1571 = vmatpush1.bf16.msra.mxu0 %v1931_v20 }
 0xe32   :  { %1573 = vmatprep.subr.bf16.mxu0 %v1934_v23 }
 0xe35   :  { %1575 = vmatpush1.bf16.msra.mxu0 %v1940_v28  ;;  %v953_v28 = vrot.slane %v944_v0, %v2040_v25 }
 0xe36   :  { %1577 = vmatprep.subr.bf16.mxu0 %v1944_v29 }
 0xe39   :  { %1579 = vmatpush1.bf16.msra.mxu0 %v1948_v34 }
 0xe3a   :  { %1581 = vmatprep.subr.bf16.mxu0 %v1952_v35 }
 0xe3d   :  { %1583 = vmatpush1.bf16.msra.mxu0 %v1956_v40 }
 0xe3e   :  { %1585 = vmatprep.subr.bf16.mxu0 %v1960_v41 }
 0xe41   :  { %1587 = vmatpush1.bf16.msra.mxu0 %v1964_v46 }
 0xe42   :  { %1589 = vmatprep.subr.bf16.mxu0 %v1968_v47 }
 0xe45   :  { %1591 = vmatpush1.bf16.msra.mxu0 %v1972_v50 }
 0xefb   :  { %v938_v8 = vpop.f32.mrb[6].mxu0 }
 0xefc   :  { %v939_v9 = vadd.f32 %v938_v8, %v2008_v58  ;;  %v940_v15 = vpop.f32.mrb[7].mxu0 }
 0xefd   :  { %v941_v20 = vadd.f32 %v940_v15, %v2043_v27 }
 0xefe   :  { %v956_v23 = vadd.f32 %v949_v14, %v939_v9 }
 0xeff   :  { %v957_v29 = vadd.f32 %v953_v28, %v941_v20 }
 0xf00   :  { %1676 = vtanh.f32 %v956_v23  ;;  %v1324_v40 = vmul.f32 -1.442695, %v956_v23 }
 0xf01   :  { %1678 = vtanh.f32 %v957_v29  ;;  %v1325_v41 = vmul.f32 -1.442695, %v957_v29 }
 0xf02   :  { %1680 = vpow2.f32 %v1324_v40 }
 0xf03   :  { %1682 = vpow2.f32 %v1325_v41 }
 0xf0a   :  { %v1677_v34 = vpop.eup %1676 }
 0xf0b   :  { %973 = vrot.lane.b32.xlu1 %v1677_v34, %s1841_s30  ;;  %v1679_v35 = vpop.eup %1678 }
 0xf0c   :  { %v1681_v46 = vpop.eup %1680 }
 0xf0d   :  { %v964_v47 = vadd.f32 1.0, %v1681_v46  ;;  %v1683_v50 = vpop.eup %1682 }
 0xf0e   :  { %v965_v63 = vadd.f32 1.0, %v1683_v50 }
 0xf0f   :  { %991 = vrot.lane.b32.xlu1 %v1679_v35, %s1841_s30  ;;  %1684 = vrcp.f32 %v964_v47 }
 0xf10   :  { %1686 = vrcp.f32 %v965_v63 }
 0xf19   :  { %v1685_v7 = vpop.eup %1684 }
 0xf1a   :  { %v1687_v11 = vpop.eup %1686  ;;  %v971_v16 = vmul.f32 %v1685_v7, %v2172_v49 }
 0xf1b   :  { %v989_v19 = vmul.f32 %v1687_v11, %v2176_v53 }
 0xf7d   :  { %v974_v10 = vpop.permute.xlu1 %973 }
 0xf7e   :  { %v976_v3 = vmul.f32 %v1685_v7, %v974_v10  ;;  %v1231_v10 = vld [vmem:[#allocation2 + $0x7] ss:$8 sm:$0x3] }
 0xf80   :  { %978 = vrot.lane.b32.xlu0 %v976_v3, %s1842_s3 }
 0xf81   :  { %v992_v12 = vpop.permute.xlu1 %991 }
 0xf82   :  { %v994_v13 = vmul.f32 %v1687_v11, %v992_v12 }
 0xf84   :  { %996 = vrot.lane.b32.xlu0 %v994_v13, %s1842_s3 }
 0xff2   :  { %v979_v17 = vpop.permute.xlu0 %978 }
 0xff3   :  { %v981_v18 = vadd.f32 %v979_v17, %v971_v16 }
 0xff5   :  { %1688 = vtanh.f32 %v981_v18 }
 0xff6   :  { %v997_v21 = vpop.permute.xlu0 %996 }
 0xff7   :  { %v999_v22 = vadd.f32 %v997_v21, %v989_v19 }
 0xff9   :  { %1690 = vtanh.f32 %v999_v22 }
 0xfff   :  { %v1689_v24 = vpop.eup %1688 }
0x1000   :  { %984 = vrot.lane.b32.xlu1 %v1689_v24, %s1841_s30 }
0x1003   :  { %v1691_v26 = vpop.eup %1690 }
0x1004   :  { %1002 = vrot.lane.b32.xlu0 %v1691_v26, %s1841_s30 }
0x1072   :  { %v985_v30 = vpop.permute.xlu1 %984 }
0x1073   :  { %v987_v31 = vmul.f32 %v1685_v7, %v985_v30 }
0x1075   :  { %1010 = vrot.lane.b32.xlu0 %v987_v31, %s1843_s6  ;;  %1007 = vrot.lane.b32.xlu1 %v987_v31, %s1841_s30 }
0x1076   :  { %v1003_v32 = vpop.permute.xlu0 %1002 }
0x1077   :  { %v1005_v36 = vmul.f32 %v1687_v11, %v1003_v32  ;;  %v1236_v11 = vrot.slane %v1231_v10, %v2040_v25 }
0x10e7   :  { %v1011_v33 = vpop.permute.xlu0 %1010  ;;  %v1008_v4 = vpop.permute.xlu1 %1007 }
0x10e8   :  { %v1013_v37 = vsel %vm290_vm2, 0.0, %v1008_v4 }
0x10e9   :  { %v1014_v38 = vsel %vm292_vm3, %v1013_v37, %v1011_v33 }
0x10ea   :  { %v1015_v39 = vsel %vm294_vm4, %v1014_v38, %v1005_v36 }
0x10eb   :  { %1081 = vmatmul.mubr.f32.vlgmr.msra.gmra.mrb[6].mxu1 %v1015_v39 }
0x11be   :  { %v1082_v43 = vpop.f32.mrb[6].mxu1 }
0x11bf   :  { %v1083_v44 = vadd.f32 %v1082_v43, %v2008_v58  ;;  %v1084_v48 = vpop.f32.mrb[7].mxu1 }
0x11c0   :  { %v1085_v49 = vadd.f32 %v1084_v48, %v2043_v27 }
0x11c1   :  { %v1100_v51 = vadd.f32 %v1093_v45, %v1083_v44 }
0x11c2   :  { %v1101_v53 = vadd.f32 %v1097_v52, %v1085_v49 }
0x11c3   :  { %1692 = vtanh.f32 %v1100_v51  ;;  %v1326_v61 = vmul.f32 -1.442695, %v1100_v51 }
0x11c4   :  { %1694 = vtanh.f32 %v1101_v53  ;;  %v1327_v58 = vmul.f32 -1.442695, %v1101_v53 }
0x11c5   :  { %1696 = vpow2.f32 %v1326_v61 }
0x11c6   :  { %1698 = vpow2.f32 %v1327_v58 }
0x11cd   :  { %v1693_v56 = vpop.eup %1692 }
0x11ce   :  { %1117 = vrot.lane.b32.xlu1 %v1693_v56, %s1841_s30  ;;  %v1695_v57 = vpop.eup %1694 }
0x11cf   :  { %v1697_v55 = vpop.eup %1696 }
0x11d0   :  { %v1108_v54 = vadd.f32 1.0, %v1697_v55  ;;  %v1699_v62 = vpop.eup %1698 }
0x11d1   :  { %v1109_v2 = vadd.f32 1.0, %v1699_v62 }
0x11d2   :  { %1135 = vrot.lane.b32.xlu1 %v1695_v57, %s1841_s30  ;;  %1700 = vrcp.f32 %v1108_v54 }
0x11d3   :  { %1702 = vrcp.f32 %v1109_v2 }
0x11dc   :  { %v1701_v59 = vpop.eup %1700 }
0x11dd   :  { %v1703_v6 = vpop.eup %1702  ;;  %v1115_v8 = vmul.f32 %v1701_v59, %v981_v18 }
0x11de   :  { %v1133_v15 = vmul.f32 %v1703_v6, %v999_v22 }
0x1240   :  { %v1118_v60 = vpop.permute.xlu1 %1117 }
0x1241   :  { %v1120_v5 = vmul.f32 %v1701_v59, %v1118_v60 }
0x1243   :  { %1122 = vrot.lane.b32.xlu0 %v1120_v5, %s1842_s3 }
0x1244   :  { %v1136_v1 = vpop.permute.xlu1 %1135 }
0x1245   :  { %v1138_v0 = vmul.f32 %v1703_v6, %v1136_v1 }
0x1247   :  { %1140 = vrot.lane.b32.xlu0 %v1138_v0, %s1842_s3 }
0x12b5   :  { %v1123_v9 = vpop.permute.xlu0 %1122 }
0x12b6   :  { %v1125_v14 = vadd.f32 %v1123_v9, %v1115_v8 }
0x12b8   :  { %1704 = vtanh.f32 %v1125_v14 }
0x12b9   :  { %v1141_v20 = vpop.permute.xlu0 %1140 }
0x12ba   :  { %v1143_v23 = vadd.f32 %v1141_v20, %v1133_v15 }
0x12bc   :  { %1706 = vtanh.f32 %v1143_v23 }
0x12c2   :  { %v1705_v28 = vpop.eup %1704 }
0x12c3   :  { %1128 = vrot.lane.b32.xlu1 %v1705_v28, %s1841_s30 }
0x12c6   :  { %v1707_v29 = vpop.eup %1706 }
0x12c7   :  { %1146 = vrot.lane.b32.xlu0 %v1707_v29, %s1841_s30 }
0x1335   :  { %v1129_v34 = vpop.permute.xlu1 %1128 }
0x1336   :  { %v1131_v35 = vmul.f32 %v1701_v59, %v1129_v34 }
0x1338   :  { %1154 = vrot.lane.b32.xlu0 %v1131_v35, %s1843_s6  ;;  %1151 = vrot.lane.b32.xlu1 %v1131_v35, %s1841_s30 }
0x1339   :  { %v1147_v40 = vpop.permute.xlu0 %1146 }
0x133a   :  { %v1149_v47 = vmul.f32 %v1703_v6, %v1147_v40 }
0x13aa   :  { %v1155_v41 = vpop.permute.xlu0 %1154  ;;  %v1152_v46 = vpop.permute.xlu1 %1151 }
0x13ab   :  { %v1157_v50 = vsel %vm290_vm2, 0.0, %v1152_v46 }
0x13ac   :  { %v1158_v63 = vsel %vm292_vm3, %v1157_v50, %v1155_v41 }
0x13ad   :  { %v1159_v7 = vsel %vm294_vm4, %v1158_v63, %v1149_v47 }
0x13ae   :  { %1225 = vmatmul.mubr.f32.vlgmr.msra.gmra.mrb[8].mxu0 %v1159_v7 }
0x1481   :  { %v1226_v3 = vpop.f32.mrb[8].mxu0 }
0x1482   :  { %v1227_v12 = vpop.f32.mrb[9].mxu0 }
0x1483   :  { %v1228_v13 = vadd.f32 %v1227_v12, %v2043_v27 }
0x1485   :  { %v1238_v16 = vadd.f32 %v1236_v11, %v1228_v13 }
0x1487   :  { %1708 = vtanh.f32 %v1238_v16  ;;  %v1328_v18 = vmul.f32 -1.442695, %v1238_v16 }
0x1489   :  { %1710 = vpow2.f32 %v1328_v18 }
0x1491   :  { %v1709_v17 = vpop.eup %1708 }
0x1492   :  { %1248 = vrot.lane.b32.xlu1 %v1709_v17, %s1841_s30 }
0x1493   :  { %v1711_v19 = vpop.eup %1710 }
0x1494   :  { %v1242_v21 = vadd.f32 1.0, %v1711_v19 }
0x1496   :  { %1712 = vrcp.f32 %v1242_v21 }
0x14a0   :  { %v1713_v22 = vpop.eup %1712 }
0x14a1   :  { %v1246_v25 = vmul.f32 %v1713_v22, %v1143_v23 }
0x1504   :  { %v1249_v24 = vpop.permute.xlu1 %1248 }
0x1505   :  { %v1251_v26 = vmul.f32 %v1713_v22, %v1249_v24 }
0x1507   :  { %1253 = vrot.lane.b32.xlu0 %v1251_v26, %s1842_s3 }
0x150b   :  { %1263 = vrot.lane.b32.xlu0 %v1131_v35, %s1842_s3 }
0x1579   :  { %v1254_v30 = vpop.permute.xlu0 %1253 }
0x157a   :  { %v1256_v27 = vadd.f32 %v1254_v30, %v1246_v25 }
0x157c   :  { %1714 = vtanh.f32 %v1256_v27 }
0x157d   :  { %v1264_v31 = vpop.permute.xlu0 %1263 }
0x157e   :  { %1267 = vst.msk [vmem:[#allocation9] sm:$0x1] %vm1266_vm5, %v1264_v31 }
0x1586   :  { %v1715_v32 = vpop.eup %1714 }
0x1587   :  { %1259 = vrot.lane.b32.xlu1 %v1715_v32, %s1841_s30 }
0x158b   :  { %1269 = vrot.lane.b32.xlu1 %v1125_v14, %s1843_s6 }
0x158f   :  { %1279 = vrot.lane.b32.xlu1 %v1256_v27, %s1843_s6 }
0x15f9   :  { %v1260_v33 = vpop.permute.xlu1 %1259 }
0x15fa   :  { %v1262_v4 = vmul.f32 %v1713_v22, %v1260_v33 }
0x15fc   :  { %1274 = vrot.lane.b32.xlu0 %v1262_v4, %s1842_s3 }
0x15fd   :  { %v1270_v36 = vpop.permute.xlu1 %1269 }
0x15fe   :  { %1272 = vst.msk [vmem:[#allocation10] sm:$0x1] %vm1266_vm5, %v1270_v36 }
0x1601   :  { %v1280_v37 = vpop.permute.xlu1 %1279 }
0x1602   :  { %1282 = vst.msk [vmem:[#allocation10 + $0x1] sm:$0x1] %vm1266_vm5, %v1280_v37 }
0x1603   :  { %1793 = shalt.err (!%p1790_p0)
}
0x1604   :  { %s1794_s12 = scalar_lea.hbm %s2276_s5, 32 }
0x1605   :  { %p1795_p1 = scmp.ne.s32.totalorder %s2276_s5, %s1794_s12  ;;  %p1798_p2 = scmp.lt.u32.totalorder %s1794_s12, %s2276_s5 }
0x1607   :  { %p1800_p3 = pnand %p1798_p2, %p1795_p1 }
0x1609   :  { %1803 = shalt.err (!%p1800_p3)
}
0x160a   :  { %1302 = dma.vmem_to_hbm [thread:$0]  %s1300_s8, 32, %s2276_s5, [#allocation11]  }
0x160b   :  { %s1845_s18 = smov [#allocation9]  }
0x160c   :  { %s1289_s19 = sshll.u32 %s1845_s18, 4  ;;  %s1290_s19 = int_to_ptr.vmem [resolvable:$true] %s1289_s19 }
0x160d   :  { %s1804_s20 = scalar_lea.vmem %s1290_s19, 32  ;;  %p1809_p5 = scmp.lt.s32.totalorder %s1290_s19, %s1290_s19 }
0x160e   :  { %p1805_p4 = scmp.ne.s32.totalorder %s1290_s19, %s1804_s20  ;;  %p1810_p6 = scmp.lt.s32.totalorder %s1804_s20, %s1804_s20 }
0x1610   :  { %p1811_p7 = por %p1810_p6, %p1809_p5 }
0x1612   :  { %p1812_p8 = pnand %p1811_p7, %p1805_p4 }
0x166e   :  { %v1275_v38 = vpop.permute.xlu0 %1274 }
0x166f   :  { %1277 = vst.msk [vmem:[#allocation9 + $0x1] sm:$0x1] %vm1266_vm5, %v1275_v38 }
0x1670   :  { %1815 = shalt.err (!%p1812_p8)
}
0x1671   :  { %s1816_s24 = scalar_lea.hbm %s2275_s4, 32 }
0x1672   :  { %p1817_p9 = scmp.ne.s32.totalorder %s2275_s4, %s1816_s24  ;;  %p1820_p10 = scmp.lt.u32.totalorder %s1816_s24, %s2275_s4 }
0x1674   :  { %p1822_p11 = pnand %p1820_p10, %p1817_p9 }
0x1676   :  { %1825 = shalt.err (!%p1822_p11)
}
0x1677   :  { %1292 = dma.vmem_to_hbm [thread:$0]  %s1290_s19, 32, %s2275_s4, [#allocation5]  }
0x1678   :  { %1830 = dma.done.wait [#allocation5], 32  }
0x1679   :  { %1831 = vsyncadd [#allocation5], 4294967264 }
0x167a   :  { %1832 = dma.done.wait [#allocation11], 32  }
0x167b   :  { %1833 = vsyncadd [#allocation11], 4294967264 }
0x167c   :  { %1309 = vsyncpa [#allocation4], 1 }
0x167d   :  { %1310 = vsyncpa [#allocation7], 1 }
0x167e   :  { %1311 = vsyncpa [#allocation5], 1 }
0x167f   :  { %1312 = vsyncpa [#allocation11], 1 }

</bundles_post_ra>
